<compile_context>
chip_gen: v7x
topology: tpu7x:2x2x1
jax: 0.10.0
libtpu: 0.0.40
codegen_flags: <defaults>
</compile_context>

<pallas_src>
import functools

import numpy as np
import jax
import jax.numpy as jnp
from jax import lax
from jax.experimental import pallas as pl
from jax.experimental.pallas import tpu as pltpu

LANE = 128          # padded channel width for every conv / head operand
K1_PAD = 128        # conv1 im2col feature dim (3*3*C = 36) padded to 128


def _conv_out(n, k, s):
    return (n - k) // s + 1


# ----------------------------- fused kernel --------------------------------

def _fused_kernel(p1_ref, w1_ref, b1_ref, w2_ref, b2_ref, w3_ref, b3_ref,
                  f1w_ref, f1b_ref, f2w_ref, f2b_ref, out_ref,
                  *, batch, n_actions, group_rows):
    """Whole Dueling-DQN forward on one TensorCore, all activations in VMEM.

    p1  : (4*group_rows, 128) bf16  conv1 patches, rows grouped per conv2 tap
    w1  : (128, 128)  bf16          conv1 weights  (features x out-ch, padded)
    w2  : (4, 128, 128) bf16        conv2 per-tap  (in-ch x out-ch, padded)
    w3  : (4, 128, 128) bf16        conv3 per-tap
    f1w : (128, 1024) bf16          [value | advantage] hidden layers
    f2w : (1024, 128) bf16          block-diagonal second FC (adv cols 0..A-1,
                                    value col A)
    out : (B, 128) f32              q in lanes 0..A-1 (lane-dense store)
    """
    # ---- conv1: one matmul over all needed output positions -----------------
    h1 = jnp.dot(p1_ref[...], w1_ref[...], preferred_element_type=jnp.float32)
    h1 = jnp.maximum(h1 + b1_ref[...], 0.0).astype(jnp.bfloat16)   # (4G, 128)

    # ---- conv2: per-tap accumulation, tap t input = row group t of h1 -------
    acc2 = jnp.zeros((group_rows, LANE), jnp.float32)
    for t in range(4):
        acc2 = acc2 + jnp.dot(h1[t * group_rows:(t + 1) * group_rows, :],
                              w2_ref[t], preferred_element_type=jnp.float32)
    h2 = jnp.maximum(acc2 + b2_ref[...], 0.0).astype(jnp.bfloat16)  # (G, 128)

    # ---- conv3: per-tap accumulation, tap t input = h2 rows [tB, (t+1)B) ----
    acc3 = jnp.zeros((batch, LANE), jnp.float32)
    for t in range(4):
        acc3 = acc3 + jnp.dot(h2[t * batch:(t + 1) * batch, :],
                              w3_ref[t], preferred_element_type=jnp.float32)
    feats = jnp.maximum(acc3 + b3_ref[...], 0.0).astype(jnp.bfloat16)  # (B,128)

    # ---- fused dueling head --------------------------------------------------
    hid = jnp.dot(feats, f1w_ref[...], preferred_element_type=jnp.float32)
    hid = jnp.maximum(hid + f1b_ref[...], 0.0).astype(jnp.bfloat16)    # (B,1024)
    out = jnp.dot(hid, f2w_ref[...], preferred_element_type=jnp.float32)
    out = out + f2b_ref[...]                                           # (B, 128)

    adv = out[:, :n_actions]                       # (B, A)
    val = out[:, n_actions:n_actions + 1]          # (B, 1)
    # Global mean over all B*A advantages -- matches torch `advantages.mean()`.
    mean = jnp.sum(adv) / float(batch * n_actions)
    out_ref[...] = (val + (out - mean)).astype(out_ref.dtype)


def _fused_call(p1, w1, b1, w2, b2, w3, b3, f1w, f1b, f2w, f2b,
                *, batch, n_actions, group_rows):
    kernel = functools.partial(_fused_kernel, batch=batch,
                               n_actions=n_actions, group_rows=group_rows)
    full2 = lambda i: (0, 0)
    full3 = lambda i: (0, 0, 0)
    return pl.pallas_call(
        kernel,
        out_shape=jax.ShapeDtypeStruct((batch, LANE), jnp.float32),
        grid=(1,),
        in_specs=[
            pl.BlockSpec(p1.shape, full2),
            pl.BlockSpec(w1.shape, full2),
            pl.BlockSpec(b1.shape, full2),
            pl.BlockSpec(w2.shape, full3),
            pl.BlockSpec(b2.shape, full2),
            pl.BlockSpec(w3.shape, full3),
            pl.BlockSpec(b3.shape, full2),
            pl.BlockSpec(f1w.shape, full2),
            pl.BlockSpec(f1b.shape, full2),
            pl.BlockSpec(f2w.shape, full2),
            pl.BlockSpec(f2b.shape, full2),
        ],
        out_specs=pl.BlockSpec((batch, LANE), full2),
        compiler_params=pltpu.CompilerParams(dimension_semantics=("arbitrary",)),
    )(p1, w1, b1, w2, b2, w3, b3, f1w, f1b, f2w, f2b)


# -------------------- conv1 patch gather (XLA, one fusion) ------------------

def _build_row_order(batch, ho2, wo2):
    """Row ordering so every downstream tap reads a contiguous row block.

    conv2 output rows are ordered (position, batch) with the four positions
    conv3 reads listed first (in conv3-tap order); conv1 output rows are four
    contiguous groups (one per conv2 tap), each group holding, in the same
    (position, batch) order, the conv1 position that tap reads.
    """
    assert ho2 >= 2 and wo2 >= 2
    first = [(kh, kw) for kh in range(2) for kw in range(2)]       # conv3 taps
    rest = [(i, j) for i in range(ho2) for j in range(wo2) if (i, j) not in first]
    p2 = first + rest
    real = len(p2) * batch
    group_rows = ((real + 31) // 32) * 32      # sublane/bf16-pack aligned slices
    rb, ri, rj = [], [], []
    for kh in range(2):                        # conv2 tap row
        for kw in range(2):                    # conv2 tap col
            for slot in range(group_rows):
                if slot < real:
                    p, b = divmod(slot, batch)
                    i2, j2 = p2[p]
                    rb.append(b)
                    ri.append(2 * i2 + kh)
                    rj.append(2 * j2 + kw)
                else:                          # pad row (its conv2 output row is never read)
                    rb.append(0); ri.append(0); rj.append(0)
    return (np.asarray(rb, np.int32), np.asarray(ri, np.int32),
            np.asarray(rj, np.int32), group_rows)


def _conv1_patches(x_nhwc, row_b, row_i, row_j, k=3, s=2):
    """x: (B,H,W,C) NHWC -> (len(rows), K1_PAD) bf16; feature order (kh,kw,c)."""
    B, H, W, C = x_nhwc.shape
    Ho, Wo = _conv_out(H, k, s), _conv_out(W, k, s)
    taps = [x_nhwc[:, ih:ih + s * (Ho - 1) + 1:s, iw:iw + s * (Wo - 1) + 1:s, :]
            for ih in range(k) for iw in range(k)]
    full = jnp.concatenate(taps, axis=-1)                 # (B, Ho, Wo, k*k*C)
    rows = full[row_b, row_i, row_j, :]                   # (M1, k*k*C)
    rows = jnp.pad(rows, ((0, 0), (0, K1_PAD - k * k * C)))
    return rows.astype(jnp.bfloat16)


# ------------------------- one-time weight packing --------------------------

def _pack_conv1(w, b):
    """w: (O, C, 3, 3) OIHW -> (128, 128) bf16 rows=(kh,kw,c), cols padded."""
    O, C, kh, kw = w.shape
    wp = jnp.transpose(w, (2, 3, 1, 0)).reshape(kh * kw * C, O)
    wp = jnp.pad(wp, ((0, K1_PAD - kh * kw * C), (0, LANE - O)))
    bp = jnp.pad(b.reshape(1, O), ((0, 0), (0, LANE - O))).astype(jnp.float32)
    return wp.astype(jnp.bfloat16), bp


def _pack_conv_taps(w, b):
    """w: (O, I, 2, 2) OIHW -> (4, 128, 128) bf16 per-tap (in x out), padded."""
    O, I, KH, KW = w.shape
    taps = []
    for kh in range(KH):
        for kw in range(KW):
            t = jnp.transpose(w[:, :, kh, kw], (1, 0))            # (I, O)
            taps.append(jnp.pad(t, ((0, LANE - I), (0, LANE - O))))
    wp = jnp.stack(taps, axis=0).astype(jnp.bfloat16)
    bp = jnp.pad(b.reshape(1, O), ((0, 0), (0, LANE - O))).astype(jnp.float32)
    return wp, bp


def pack_params(params, input_dim, output_dim):
    H, W, _C = input_dim
    h1, w1 = _conv_out(H, 3, 2), _conv_out(W, 3, 2)
    h2, w2 = _conv_out(h1, 2, 2), _conv_out(w1, 2, 2)
    h3, w3 = _conv_out(h2, 2, 2), _conv_out(w2, 2, 2)
    assert h3 == 1 and w3 == 1, "row-grouped fused kernel assumes 1x1 conv3 output"

    c1w, c1b = _pack_conv1(params["conv1_w"], params["conv1_b"])
    c2w, c2b = _pack_conv_taps(params["conv2_w"], params["conv2_b"])
    c3w, c3b = _pack_conv_taps(params["conv3_w"], params["conv3_b"])

    # FC stage 1: [value | advantage] hidden layers as one (128, 1024) matmul.
    fc_in = params["v1_w"].shape[0]                                  # 64
    f1w = jnp.concatenate([params["v1_w"], params["a1_w"]], axis=1)  # (64, 1024)
    f1w = jnp.pad(f1w, ((0, LANE - fc_in), (0, 0))).astype(jnp.bfloat16)
    f1b = jnp.concatenate([params["v1_b"], params["a1_b"]], axis=1).astype(jnp.float32)

    # FC stage 2: block-diagonal pack, lane-padded to 128.
    A = output_dim
    hid = params["v2_w"].shape[0]                                    # 512
    f2w = jnp.zeros((2 * hid, LANE), jnp.float32)
    f2w = f2w.at[:hid, A].set(params["v2_w"][:, 0])
    f2w = f2w.at[hid:, :A].set(params["a2_w"])
    f2b = jnp.zeros((1, LANE), jnp.float32)
    f2b = f2b.at[0, :A].set(params["a2_b"][0])
    f2b = f2b.at[0, A].set(params["v2_b"][0, 0])

    return {
        "c1_w": c1w, "c1_b": c1b,
        "c2_w": c2w, "c2_b": c2b,
        "c3_w": c3w, "c3_b": c3b,
        "fc1_w": f1w, "fc1_b": f1b,
        "fc2_w": f2w.astype(jnp.bfloat16), "fc2_b": f2b,
    }


# ----------------------------- model forward -------------------------------

def dueling_dqn_forward(packed, x_nchw, input_dim, output_dim):
    B = x_nchw.shape[0]
    H, W, _C = input_dim
    ho2 = _conv_out(_conv_out(H, 3, 2), 2, 2)
    wo2 = _conv_out(_conv_out(W, 3, 2), 2, 2)
    row_b, row_i, row_j, group_rows = _build_row_order(B, ho2, wo2)

    x = jnp.transpose(x_nchw, (0, 2, 3, 1))        # single NCHW -> NHWC transpose
    patches = _conv1_patches(x, row_b, row_i, row_j)          # (4*G, 128) bf16

    out = _fused_call(
        patches,
        packed["c1_w"], packed["c1_b"],
        packed["c2_w"], packed["c2_b"],
        packed["c3_w"], packed["c3_b"],
        packed["fc1_w"], packed["fc1_b"],
        packed["fc2_w"], packed["fc2_b"],
        batch=B, n_actions=output_dim, group_rows=group_rows)   # (B, 128) f32
    return out[:, :output_dim]                                   # (B, A)


# ----------------------------- params / reference --------------------------

def init_params(key, input_dim, output_dim):
    H, W, C = input_dim
    keys = jax.random.split(key, 14)

    def winit(k, shape, fan_in):
        return jax.random.normal(k, shape, jnp.float32) / jnp.sqrt(float(fan_in))

    Ho = _conv_out(_conv_out(_conv_out(H, 3, 2), 2, 2), 2, 2)
    Wo = _conv_out(_conv_out(_conv_out(W, 3, 2), 2, 2), 2, 2)
    fc_in = 64 * Ho * Wo

    return {
        "conv1_w": winit(keys[0], (32, C, 3, 3), C * 9),
        "conv1_b": winit(keys[1], (32,), C * 9),
        "conv2_w": winit(keys[2], (64, 32, 2, 2), 32 * 4),
        "conv2_b": winit(keys[3], (64,), 32 * 4),
        "conv3_w": winit(keys[4], (64, 64, 2, 2), 64 * 4),
        "conv3_b": winit(keys[5], (64,), 64 * 4),
        "v1_w": winit(keys[6], (fc_in, 512), fc_in),
        "v1_b": winit(keys[7], (1, 512), fc_in),
        "v2_w": winit(keys[8], (512, 1), 512),
        "v2_b": winit(keys[9], (1, 1), 512),
        "a1_w": winit(keys[10], (fc_in, 512), fc_in),
        "a1_b": winit(keys[11], (1, 512), fc_in),
        "a2_w": winit(keys[12], (512, output_dim), 512),
        "a2_b": winit(keys[13], (1, output_dim), 512),
    }


def reference_forward(params, x, cast=None):
    """Pure-JAX reference matching the PyTorch forward (NCHW).

    `cast=identity` -> exact f32 torch semantics; `cast=bf16` -> matches the
    kernel's rounding points (bf16 operands, f32 accumulate, f32 epilogues).
    """
    cast = (lambda a: a) if cast is None else cast

    def conv(h, w, b, s):
        y = lax.conv_general_dilated(
            cast(h), cast(w), (s, s), "VALID",
            dimension_numbers=("NCHW", "OIHW", "NCHW"),
            preferred_element_type=jnp.float32)
        return jnp.maximum(y + b.reshape(1, -1, 1, 1), 0.0)

    def lin(h, w, b):
        return jnp.dot(cast(h), cast(w), preferred_element_type=jnp.float32) + b

    h = conv(x, params["conv1_w"], params["conv1_b"], 2)
    h = conv(h, params["conv2_w"], params["conv2_b"], 2)
    h = conv(h, params["conv3_w"], params["conv3_b"], 2)
    f = h.reshape(h.shape[0], -1)
    v = lin(jnp.maximum(lin(f, params["v1_w"], params["v1_b"]), 0.0),
            params["v2_w"], params["v2_b"])
    a = lin(jnp.maximum(lin(f, params["a1_w"], params["a1_b"]), 0.0),
            params["a2_w"], params["a2_b"])
    return v + (a - a.mean())


# ----------------------------------- main -----------------------------------

if __name__ == "__main__":
    input_dim = (16, 16, 4)      # (H, W, C) as the PyTorch module expects
    output_dim = 6
    batch = 2

    key = jax.random.PRNGKey(0)
    k_param, k_x = jax.random.split(key)
    params = init_params(k_param, input_dim, output_dim)
    packed = pack_params(params, input_dim, output_dim)

    # state: NCHW = (batch, C, H, W), matching nn.Conv2d input convention
    x = jax.random.normal(
        k_x, (batch, input_dim[2], input_dim[0], input_dim[1]), dtype=jnp.float32)

    fwd = jax.jit(functools.partial(
        dueling_dqn_forward, input_dim=input_dim, output_dim=output_dim))
    qvals = jax.block_until_ready(fwd(packed, x))

    ref_f32 = reference_forward(params, x)
    ref_bf16 = reference_forward(params, x, cast=lambda a: a.astype(jnp.bfloat16))

    assert qvals.shape == (batch, output_dim), qvals.shape
    # Tight check vs. a reference with identical bf16 rounding points.
    assert jnp.allclose(qvals, ref_bf16, rtol=2e-3, atol=2e-3), (qvals, ref_bf16)
    # Loose check vs. the exact f32 PyTorch-equivalent reference.
    assert jnp.allclose(qvals, ref_f32, rtol=1e-1, atol=1e-1), (qvals, ref_f32)
    print("KERNEL_OK")
</pallas_src>

<mosaic_0001>
module attributes {stable_mosaic.version = 11 : i64} {
  func.func @_fused_kernel(%arg0: i32, %arg1: memref<128x128xbf16, #tpu.memory_space<vmem>>, %arg2: memref<128x128xbf16, #tpu.memory_space<vmem>>, %arg3: memref<1x128xf32, #tpu.memory_space<vmem>>, %arg4: memref<4x128x128xbf16, #tpu.memory_space<vmem>>, %arg5: memref<1x128xf32, #tpu.memory_space<vmem>>, %arg6: memref<4x128x128xbf16, #tpu.memory_space<vmem>>, %arg7: memref<1x128xf32, #tpu.memory_space<vmem>>, %arg8: memref<128x1024xbf16, #tpu.memory_space<vmem>>, %arg9: memref<1x1024xf32, #tpu.memory_space<vmem>>, %arg10: memref<1024x128xbf16, #tpu.memory_space<vmem>>, %arg11: memref<1x128xf32, #tpu.memory_space<vmem>>, %arg12: memref<2x128xf32, #tpu.memory_space<vmem>>) attributes {dimension_semantics = [#tpu.dimension_semantics<arbitrary>], iteration_bounds = array<i64: 1>, scalar_prefetch = 0 : i64, scratch_operands = 0 : i64, tpu.core_type = #tpu.core_type<tc>, window_params = [{pipeline_mode = #tpu.pipeline_mode<synchronous>, transform_indices = @transform_0, window_bounds = array<i64: 128, 128>}, {pipeline_mode = #tpu.pipeline_mode<synchronous>, transform_indices = @transform_1, window_bounds = array<i64: 128, 128>}, {pipeline_mode = #tpu.pipeline_mode<synchronous>, transform_indices = @transform_2, window_bounds = array<i64: 1, 128>}, {pipeline_mode = #tpu.pipeline_mode<synchronous>, transform_indices = @transform_3, window_bounds = array<i64: 4, 128, 128>}, {pipeline_mode = #tpu.pipeline_mode<synchronous>, transform_indices = @transform_4, window_bounds = array<i64: 1, 128>}, {pipeline_mode = #tpu.pipeline_mode<synchronous>, transform_indices = @transform_5, window_bounds = array<i64: 4, 128, 128>}, {pipeline_mode = #tpu.pipeline_mode<synchronous>, transform_indices = @transform_6, window_bounds = array<i64: 1, 128>}, {pipeline_mode = #tpu.pipeline_mode<synchronous>, transform_indices = @transform_7, window_bounds = array<i64: 128, 1024>}, {pipeline_mode = #tpu.pipeline_mode<synchronous>, transform_indices = @transform_8, window_bounds = array<i64: 1, 1024>}, {pipeline_mode = #tpu.pipeline_mode<synchronous>, transform_indices = @transform_9, window_bounds = array<i64: 1024, 128>}, {pipeline_mode = #tpu.pipeline_mode<synchronous>, transform_indices = @transform_10, window_bounds = array<i64: 1, 128>}, {pipeline_mode = #tpu.pipeline_mode<synchronous>, transform_indices = @transform_11, window_bounds = array<i64: 2, 128>}]} {
    %c0 = arith.constant 0 : index
    %c0_0 = arith.constant 0 : index
    %0 = vector.load %arg1[%c0, %c0_0] : memref<128x128xbf16, #tpu.memory_space<vmem>>, vector<128x128xbf16>
    %c0_1 = arith.constant 0 : index
    %c0_2 = arith.constant 0 : index
    %1 = vector.load %arg2[%c0_1, %c0_2] : memref<128x128xbf16, #tpu.memory_space<vmem>>, vector<128x128xbf16>
    %cst = arith.constant dense<0.000000e+00> : vector<128x128xf32>
    %2 = tpu.matmul %0, %1, %cst {dimension_numbers = #tpu.dot_dimension_numbers<[1], [0], [0], [1], [0, 0, 1, 1], [], []>} : vector<128x128xbf16>, vector<128x128xbf16>, vector<128x128xf32> -> vector<128x128xf32>
    %c0_3 = arith.constant 0 : index
    %c0_4 = arith.constant 0 : index
    %3 = vector.load %arg3[%c0_3, %c0_4] : memref<1x128xf32, #tpu.memory_space<vmem>>, vector<1x128xf32>
    %4 = vector.broadcast %3 : vector<1x128xf32> to vector<128x128xf32>
    %5 = arith.addf %2, %4 : vector<128x128xf32>
    %cst_5 = arith.constant 0.000000e+00 : f32
    %6 = vector.broadcast %cst_5 : f32 to vector<128x128xf32>
    %7 = arith.maximumf %5, %6 : vector<128x128xf32>
    %8 = arith.truncf %7 : vector<128x128xf32> to vector<128x128xbf16>
    %cst_6 = arith.constant 0.000000e+00 : f32
    %9 = vector.broadcast %cst_6 : f32 to vector<32x128xf32>
    %10 = vector.extract_strided_slice %8 {offsets = [0, 0], sizes = [32, 128], strides = [1, 1]} : vector<128x128xbf16> to vector<32x128xbf16>
    %c0_7 = arith.constant 0 : index
    %c0_8 = arith.constant 0 : index
    %c0_9 = arith.constant 0 : index
    %11 = vector.load %arg4[%c0_7, %c0_8, %c0_9] : memref<4x128x128xbf16, #tpu.memory_space<vmem>>, vector<1x128x128xbf16>
    %12 = vector.shape_cast %11 : vector<1x128x128xbf16> to vector<128x128xbf16>
    %cst_10 = arith.constant dense<0.000000e+00> : vector<32x128xf32>
    %13 = tpu.matmul %10, %12, %cst_10 {dimension_numbers = #tpu.dot_dimension_numbers<[1], [0], [0], [1], [0, 0, 1, 1], [], []>} : vector<32x128xbf16>, vector<128x128xbf16>, vector<32x128xf32> -> vector<32x128xf32>
    %14 = arith.addf %9, %13 : vector<32x128xf32>
    %15 = vector.extract_strided_slice %8 {offsets = [32, 0], sizes = [32, 128], strides = [1, 1]} : vector<128x128xbf16> to vector<32x128xbf16>
    %c1 = arith.constant 1 : index
    %c0_11 = arith.constant 0 : index
    %c0_12 = arith.constant 0 : index
    %16 = vector.load %arg4[%c1, %c0_11, %c0_12] : memref<4x128x128xbf16, #tpu.memory_space<vmem>>, vector<1x128x128xbf16>
    %17 = vector.shape_cast %16 : vector<1x128x128xbf16> to vector<128x128xbf16>
    %cst_13 = arith.constant dense<0.000000e+00> : vector<32x128xf32>
    %18 = tpu.matmul %15, %17, %cst_13 {dimension_numbers = #tpu.dot_dimension_numbers<[1], [0], [0], [1], [0, 0, 1, 1], [], []>} : vector<32x128xbf16>, vector<128x128xbf16>, vector<32x128xf32> -> vector<32x128xf32>
    %19 = arith.addf %14, %18 : vector<32x128xf32>
    %20 = vector.extract_strided_slice %8 {offsets = [64, 0], sizes = [32, 128], strides = [1, 1]} : vector<128x128xbf16> to vector<32x128xbf16>
    %c2 = arith.constant 2 : index
    %c0_14 = arith.constant 0 : index
    %c0_15 = arith.constant 0 : index
    %21 = vector.load %arg4[%c2, %c0_14, %c0_15] : memref<4x128x128xbf16, #tpu.memory_space<vmem>>, vector<1x128x128xbf16>
    %22 = vector.shape_cast %21 : vector<1x128x128xbf16> to vector<128x128xbf16>
    %cst_16 = arith.constant dense<0.000000e+00> : vector<32x128xf32>
    %23 = tpu.matmul %20, %22, %cst_16 {dimension_numbers = #tpu.dot_dimension_numbers<[1], [0], [0], [1], [0, 0, 1, 1], [], []>} : vector<32x128xbf16>, vector<128x128xbf16>, vector<32x128xf32> -> vector<32x128xf32>
    %24 = arith.addf %19, %23 : vector<32x128xf32>
    %25 = vector.extract_strided_slice %8 {offsets = [96, 0], sizes = [32, 128], strides = [1, 1]} : vector<128x128xbf16> to vector<32x128xbf16>
    %c3 = arith.constant 3 : index
    %c0_17 = arith.constant 0 : index
    %c0_18 = arith.constant 0 : index
    %26 = vector.load %arg4[%c3, %c0_17, %c0_18] : memref<4x128x128xbf16, #tpu.memory_space<vmem>>, vector<1x128x128xbf16>
    %27 = vector.shape_cast %26 : vector<1x128x128xbf16> to vector<128x128xbf16>
    %cst_19 = arith.constant dense<0.000000e+00> : vector<32x128xf32>
    %28 = tpu.matmul %25, %27, %cst_19 {dimension_numbers = #tpu.dot_dimension_numbers<[1], [0], [0], [1], [0, 0, 1, 1], [], []>} : vector<32x128xbf16>, vector<128x128xbf16>, vector<32x128xf32> -> vector<32x128xf32>
    %29 = arith.addf %24, %28 : vector<32x128xf32>
    %c0_20 = arith.constant 0 : index
    %c0_21 = arith.constant 0 : index
    %30 = vector.load %arg5[%c0_20, %c0_21] : memref<1x128xf32, #tpu.memory_space<vmem>>, vector<1x128xf32>
    %31 = vector.broadcast %30 : vector<1x128xf32> to vector<32x128xf32>
    %32 = arith.addf %29, %31 : vector<32x128xf32>
    %cst_22 = arith.constant 0.000000e+00 : f32
    %33 = vector.broadcast %cst_22 : f32 to vector<32x128xf32>
    %34 = arith.maximumf %32, %33 : vector<32x128xf32>
    %35 = arith.truncf %34 : vector<32x128xf32> to vector<32x128xbf16>
    %cst_23 = arith.constant 0.000000e+00 : f32
    %36 = vector.broadcast %cst_23 : f32 to vector<2x128xf32>
    %37 = vector.extract_strided_slice %35 {offsets = [0, 0], sizes = [2, 128], strides = [1, 1]} : vector<32x128xbf16> to vector<2x128xbf16>
    %c0_24 = arith.constant 0 : index
    %c0_25 = arith.constant 0 : index
    %c0_26 = arith.constant 0 : index
    %38 = vector.load %arg6[%c0_24, %c0_25, %c0_26] : memref<4x128x128xbf16, #tpu.memory_space<vmem>>, vector<1x128x128xbf16>
    %39 = vector.shape_cast %38 : vector<1x128x128xbf16> to vector<128x128xbf16>
    %cst_27 = arith.constant dense<0.000000e+00> : vector<2x128xf32>
    %40 = tpu.matmul %37, %39, %cst_27 {dimension_numbers = #tpu.dot_dimension_numbers<[1], [0], [0], [1], [0, 0, 1, 1], [], []>} : vector<2x128xbf16>, vector<128x128xbf16>, vector<2x128xf32> -> vector<2x128xf32>
    %41 = arith.addf %36, %40 : vector<2x128xf32>
    %42 = vector.extract_strided_slice %35 {offsets = [2, 0], sizes = [2, 128], strides = [1, 1]} : vector<32x128xbf16> to vector<2x128xbf16>
    %c1_28 = arith.constant 1 : index
    %c0_29 = arith.constant 0 : index
    %c0_30 = arith.constant 0 : index
    %43 = vector.load %arg6[%c1_28, %c0_29, %c0_30] : memref<4x128x128xbf16, #tpu.memory_space<vmem>>, vector<1x128x128xbf16>
    %44 = vector.shape_cast %43 : vector<1x128x128xbf16> to vector<128x128xbf16>
    %cst_31 = arith.constant dense<0.000000e+00> : vector<2x128xf32>
    %45 = tpu.matmul %42, %44, %cst_31 {dimension_numbers = #tpu.dot_dimension_numbers<[1], [0], [0], [1], [0, 0, 1, 1], [], []>} : vector<2x128xbf16>, vector<128x128xbf16>, vector<2x128xf32> -> vector<2x128xf32>
    %46 = arith.addf %41, %45 : vector<2x128xf32>
    %47 = vector.extract_strided_slice %35 {offsets = [4, 0], sizes = [2, 128], strides = [1, 1]} : vector<32x128xbf16> to vector<2x128xbf16>
    %c2_32 = arith.constant 2 : index
    %c0_33 = arith.constant 0 : index
    %c0_34 = arith.constant 0 : index
    %48 = vector.load %arg6[%c2_32, %c0_33, %c0_34] : memref<4x128x128xbf16, #tpu.memory_space<vmem>>, vector<1x128x128xbf16>
    %49 = vector.shape_cast %48 : vector<1x128x128xbf16> to vector<128x128xbf16>
    %cst_35 = arith.constant dense<0.000000e+00> : vector<2x128xf32>
    %50 = tpu.matmul %47, %49, %cst_35 {dimension_numbers = #tpu.dot_dimension_numbers<[1], [0], [0], [1], [0, 0, 1, 1], [], []>} : vector<2x128xbf16>, vector<128x128xbf16>, vector<2x128xf32> -> vector<2x128xf32>
    %51 = arith.addf %46, %50 : vector<2x128xf32>
    %52 = vector.extract_strided_slice %35 {offsets = [6, 0], sizes = [2, 128], strides = [1, 1]} : vector<32x128xbf16> to vector<2x128xbf16>
    %c3_36 = arith.constant 3 : index
    %c0_37 = arith.constant 0 : index
    %c0_38 = arith.constant 0 : index
    %53 = vector.load %arg6[%c3_36, %c0_37, %c0_38] : memref<4x128x128xbf16, #tpu.memory_space<vmem>>, vector<1x128x128xbf16>
    %54 = vector.shape_cast %53 : vector<1x128x128xbf16> to vector<128x128xbf16>
    %cst_39 = arith.constant dense<0.000000e+00> : vector<2x128xf32>
    %55 = tpu.matmul %52, %54, %cst_39 {dimension_numbers = #tpu.dot_dimension_numbers<[1], [0], [0], [1], [0, 0, 1, 1], [], []>} : vector<2x128xbf16>, vector<128x128xbf16>, vector<2x128xf32> -> vector<2x128xf32>
    %56 = arith.addf %51, %55 : vector<2x128xf32>
    %c0_40 = arith.constant 0 : index
    %c0_41 = arith.constant 0 : index
    %57 = vector.load %arg7[%c0_40, %c0_41] : memref<1x128xf32, #tpu.memory_space<vmem>>, vector<1x128xf32>
    %58 = vector.broadcast %57 : vector<1x128xf32> to vector<2x128xf32>
    %59 = arith.addf %56, %58 : vector<2x128xf32>
    %cst_42 = arith.constant 0.000000e+00 : f32
    %60 = vector.broadcast %cst_42 : f32 to vector<2x128xf32>
    %61 = arith.maximumf %59, %60 : vector<2x128xf32>
    %62 = arith.truncf %61 : vector<2x128xf32> to vector<2x128xbf16>
    %c0_43 = arith.constant 0 : index
    %c0_44 = arith.constant 0 : index
    %63 = vector.load %arg8[%c0_43, %c0_44] : memref<128x1024xbf16, #tpu.memory_space<vmem>>, vector<128x1024xbf16>
    %cst_45 = arith.constant dense<0.000000e+00> : vector<2x1024xf32>
    %64 = tpu.matmul %62, %63, %cst_45 {dimension_numbers = #tpu.dot_dimension_numbers<[1], [0], [0], [1], [0, 0, 1, 1], [], []>} : vector<2x128xbf16>, vector<128x1024xbf16>, vector<2x1024xf32> -> vector<2x1024xf32>
    %c0_46 = arith.constant 0 : index
    %c0_47 = arith.constant 0 : index
    %65 = vector.load %arg9[%c0_46, %c0_47] : memref<1x1024xf32, #tpu.memory_space<vmem>>, vector<1x1024xf32>
    %66 = vector.broadcast %65 : vector<1x1024xf32> to vector<2x1024xf32>
    %67 = arith.addf %64, %66 : vector<2x1024xf32>
    %cst_48 = arith.constant 0.000000e+00 : f32
    %68 = vector.broadcast %cst_48 : f32 to vector<2x1024xf32>
    %69 = arith.maximumf %67, %68 : vector<2x1024xf32>
    %70 = arith.truncf %69 : vector<2x1024xf32> to vector<2x1024xbf16>
    %c0_49 = arith.constant 0 : index
    %c0_50 = arith.constant 0 : index
    %71 = vector.load %arg10[%c0_49, %c0_50] : memref<1024x128xbf16, #tpu.memory_space<vmem>>, vector<1024x128xbf16>
    %cst_51 = arith.constant dense<0.000000e+00> : vector<2x128xf32>
    %72 = tpu.matmul %70, %71, %cst_51 {dimension_numbers = #tpu.dot_dimension_numbers<[1], [0], [0], [1], [0, 0, 1, 1], [], []>} : vector<2x1024xbf16>, vector<1024x128xbf16>, vector<2x128xf32> -> vector<2x128xf32>
    %c0_52 = arith.constant 0 : index
    %c0_53 = arith.constant 0 : index
    %73 = vector.load %arg11[%c0_52, %c0_53] : memref<1x128xf32, #tpu.memory_space<vmem>>, vector<1x128xf32>
    %74 = vector.broadcast %73 : vector<1x128xf32> to vector<2x128xf32>
    %75 = arith.addf %72, %74 : vector<2x128xf32>
    %76 = vector.extract_strided_slice %75 {offsets = [0, 0], sizes = [2, 6], strides = [1, 1]} : vector<2x128xf32> to vector<2x6xf32>
    %77 = vector.extract_strided_slice %75 {offsets = [0, 6], sizes = [2, 1], strides = [1, 1]} : vector<2x128xf32> to vector<2x1xf32>
    %78 = vector.shape_cast %76 : vector<2x6xf32> to vector<1x2x6xf32>
    %cst_54 = arith.constant dense<0.000000e+00> : vector<1xf32>
    %79 = vector.multi_reduction <add>, %78, %cst_54 [1, 2] : vector<1x2x6xf32> to vector<1xf32>
    %80 = vector.shape_cast %79 : vector<1xf32> to vector<1x1x1xf32>
    %81 = vector.extract %80[0, 0, 0] : f32 from vector<1x1x1xf32>
    %cst_55 = arith.constant 1.200000e+01 : f32
    %82 = arith.divf %81, %cst_55 : f32
    %83 = vector.broadcast %82 : f32 to vector<2x128xf32>
    %84 = arith.subf %75, %83 : vector<2x128xf32>
    %85 = vector.broadcast %77 : vector<2x1xf32> to vector<2x128xf32>
    %86 = arith.addf %85, %84 : vector<2x128xf32>
    %c0_56 = arith.constant 0 : index
    %c0_57 = arith.constant 0 : index
    %87 = vector.load %arg12[%c0_56, %c0_57] : memref<2x128xf32, #tpu.memory_space<vmem>>, vector<2x128xf32>
    tpu.vector_store %arg12[%c0_56, %c0_57], %86 {strides = array<i32>} : memref<2x128xf32, #tpu.memory_space<vmem>>, vector<2x128xf32>,
    return
  }
  func.func @transform_0(%arg0: i32) -> (i32, i32) {
    %c0_i32 = arith.constant 0 : i32
    %c0_i32_0 = arith.constant 0 : i32
    %c0_i32_1 = arith.constant 0 : i32
    return %c0_i32, %c0_i32_0 : i32, i32
  }
  func.func @transform_1(%arg0: i32) -> (i32, i32) {
    %c0_i32 = arith.constant 0 : i32
    %c0_i32_0 = arith.constant 0 : i32
    %c0_i32_1 = arith.constant 0 : i32
    return %c0_i32, %c0_i32_0 : i32, i32
  }
  func.func @transform_2(%arg0: i32) -> (i32, i32) {
    %c0_i32 = arith.constant 0 : i32
    %c0_i32_0 = arith.constant 0 : i32
    %c0_i32_1 = arith.constant 0 : i32
    return %c0_i32, %c0_i32_0 : i32, i32
  }
  func.func @transform_3(%arg0: i32) -> (i32, i32, i32) {
    %c0_i32 = arith.constant 0 : i32
    %c0_i32_0 = arith.constant 0 : i32
    %c0_i32_1 = arith.constant 0 : i32
    %c0_i32_2 = arith.constant 0 : i32
    return %c0_i32, %c0_i32_0, %c0_i32_1 : i32, i32, i32
  }
  func.func @transform_4(%arg0: i32) -> (i32, i32) {
    %c0_i32 = arith.constant 0 : i32
    %c0_i32_0 = arith.constant 0 : i32
    %c0_i32_1 = arith.constant 0 : i32
    return %c0_i32, %c0_i32_0 : i32, i32
  }
  func.func @transform_5(%arg0: i32) -> (i32, i32, i32) {
    %c0_i32 = arith.constant 0 : i32
    %c0_i32_0 = arith.constant 0 : i32
    %c0_i32_1 = arith.constant 0 : i32
    %c0_i32_2 = arith.constant 0 : i32
    return %c0_i32, %c0_i32_0, %c0_i32_1 : i32, i32, i32
  }
  func.func @transform_6(%arg0: i32) -> (i32, i32) {
    %c0_i32 = arith.constant 0 : i32
    %c0_i32_0 = arith.constant 0 : i32
    %c0_i32_1 = arith.constant 0 : i32
    return %c0_i32, %c0_i32_0 : i32, i32
  }
  func.func @transform_7(%arg0: i32) -> (i32, i32) {
    %c0_i32 = arith.constant 0 : i32
    %c0_i32_0 = arith.constant 0 : i32
    %c0_i32_1 = arith.constant 0 : i32
    return %c0_i32, %c0_i32_0 : i32, i32
  }
  func.func @transform_8(%arg0: i32) -> (i32, i32) {
    %c0_i32 = arith.constant 0 : i32
    %c0_i32_0 = arith.constant 0 : i32
    %c0_i32_1 = arith.constant 0 : i32
    return %c0_i32, %c0_i32_0 : i32, i32
  }
  func.func @transform_9(%arg0: i32) -> (i32, i32) {
    %c0_i32 = arith.constant 0 : i32
    %c0_i32_0 = arith.constant 0 : i32
    %c0_i32_1 = arith.constant 0 : i32
    return %c0_i32, %c0_i32_0 : i32, i32
  }
  func.func @transform_10(%arg0: i32) -> (i32, i32) {
    %c0_i32 = arith.constant 0 : i32
    %c0_i32_0 = arith.constant 0 : i32
    %c0_i32_1 = arith.constant 0 : i32
    return %c0_i32, %c0_i32_0 : i32, i32
  }
  func.func @transform_11(%arg0: i32) -> (i32, i32) {
    %c0_i32 = arith.constant 0 : i32
    %c0_i32_0 = arith.constant 0 : i32
    %c0_i32_1 = arith.constant 0 : i32
    return %c0_i32, %c0_i32_0 : i32, i32
  }
}

</mosaic_0001>

<bundles_post_ra>
// kernel: dueling_dqn_forward.1
= control target key start
LH: loop header
LB: loop body
LE: loop exit
PB: predicated region body
PF: predicated region fallthrough
CT: control target
= control target key end

     0   :  { %s4175_s0 = inlined_call_operand.vmem [shape: bf16[128,128], index: 0, kind: input, shape index: {}]   ;;  %s4176_s1 = inlined_call_operand.vmem [shape: bf16[128,128], index: 1, kind: input, shape index: {}]   ;;  %s4177_s2 = inlined_call_operand.vmem [shape: f32[1,128], index: 2, kind: input, shape index: {}]   ;;  %s4178_s3 = inlined_call_operand.vmem [shape: bf16[4,128,128], index: 3, kind: input, shape index: {}]   ;;  %s4179_s4 = inlined_call_operand.vmem [shape: f32[1,128], index: 4, kind: input, shape index: {}]   ;;  %s4180_s5 = inlined_call_operand.vmem [shape: bf16[4,128,128], index: 5, kind: input, shape index: {}]   ;;  %s4181_s6 = inlined_call_operand.vmem [shape: f32[1,128], index: 6, kind: input, shape index: {}]   ;;  %s4182_s7 = inlined_call_operand.vmem [shape: bf16[128,1024], index: 7, kind: input, shape index: {}]   ;;  %s4183_s8 = inlined_call_operand.vmem [shape: f32[1,1024], index: 8, kind: input, shape index: {}]   ;;  %s4184_s9 = inlined_call_operand.vmem [shape: bf16[1024,128], index: 9, kind: input, shape index: {}]   ;;  %s4185_s10 = inlined_call_operand.vmem [shape: f32[1,128], index: 10, kind: input, shape index: {}]   ;;  %s4186_s11 = inlined_call_operand.hbm [shape: f32[2,128], index: 11, kind: output, shape index: {}]  }
   0x1   :  { %v3207_v0 = vld [vmem:[%s4176_s1] sm:$0xff]   ;;  %v3208_v1 = vld [vmem:[%s4176_s1 + $0x8] sm:$0xff]   ;;  %v3209_v2 = vld [vmem:[%s4176_s1 + $0x10] sm:$0xff]  }
   0x2   :  { %3007 = vmatprep.subr.bf16.mxu0 %v3207_v0  ;;  %v3210_v3 = vld [vmem:[%s4176_s1 + $0x18] sm:$0xff]   ;;  %v3215_v4 = vld [vmem:[%s4175_s0] sm:$0xff]   ;;  %v3212_v6 = vld [vmem:[%s4176_s1 + $0x28] sm:$0xff]  }
   0x3   :  { %3008 = vmatpush3.bf16.msra.mxu0 %v3207_v0  ;;  %3023 = vmatprep.mubr.bf16.mxu0 %v3215_v4  ;;  %v3211_v5 = vld [vmem:[%s4176_s1 + $0x20] sm:$0xff]   ;;  %v3213_v8 = vld [vmem:[%s4176_s1 + $0x30] sm:$0xff]   ;;  %v3227_v9 = vld [vmem:[%s4178_s3 + $0x48] sm:$0xff]  }
   0x4   :  { %3009 = vmatprep.subr.bf16.mxu0 %v3208_v1  ;;  %v3225_v7 = vld [vmem:[%s4178_s3 + $0x40] sm:$0xff]   ;;  %v3229_v10 = vld [vmem:[%s4178_s3 + $0x50] sm:$0xff]   ;;  %v3214_v11 = vld [vmem:[%s4176_s1 + $0x38] sm:$0xff]  }
   0x5   :  { %3039 = vmatprep.subr.bf16.mxu1 %v3225_v7  ;;  %v3231_v12 = vld [vmem:[%s4178_s3 + $0x58] sm:$0xff]   ;;  %v3223_v13 = vld [vmem:[%s4178_s3] sm:$0xff]   ;;  %v3216_v14 = vld [vmem:[%s4175_s0 + $0x8] sm:$0xff]  }
   0x6   :  { %3040 = vmatpush3.bf16.msra.mxu1 %v3225_v7  ;;  %v3217_v15 = vld [vmem:[%s4175_s0 + $0x10] sm:$0xff]   ;;  %v3224_v16 = vld [vmem:[%s4178_s3 + $0x8] sm:$0xff]   ;;  %v3218_v18 = vld [vmem:[%s4175_s0 + $0x18] sm:$0xff]  }
   0x7   :  { %3010 = vmatpush3.bf16.msra.mxu0 %v3208_v1  ;;  %3041 = vmatprep.subr.bf16.mxu1 %v3227_v9  ;;  %v3226_v17 = vld [vmem:[%s4178_s3 + $0x10] sm:$0xff]   ;;  %v3219_v19 = vld [vmem:[%s4175_s0 + $0x20] sm:$0xff]   ;;  %v3228_v20 = vld [vmem:[%s4178_s3 + $0x18] sm:$0xff]  }
   0x8   :  { %3011 = vmatprep.subr.bf16.mxu0 %v3209_v2  ;;  %v3230_v21 = vld [vmem:[%s4178_s3 + $0x20] sm:$0xff]   ;;  %v3220_v22 = vld [vmem:[%s4175_s0 + $0x28] sm:$0xff]   ;;  %v3221_v23 = vld [vmem:[%s4175_s0 + $0x30] sm:$0xff]  }
   0x9   :  { %v3232_v24 = vld [vmem:[%s4178_s3 + $0x28] sm:$0xff]   ;;  %v3222_v25 = vld [vmem:[%s4175_s0 + $0x38] sm:$0xff]  }
   0xa   :  { %3042 = vmatpush3.bf16.msra.mxu1 %v3227_v9 }
   0xb   :  { %3012 = vmatpush3.bf16.msra.mxu0 %v3209_v2  ;;  %3043 = vmatprep.subr.bf16.mxu1 %v3229_v10 }
   0xc   :  { %3013 = vmatprep.subr.bf16.mxu0 %v3210_v3 }
   0xe   :  { %3044 = vmatpush3.bf16.msra.mxu1 %v3229_v10 }
   0xf   :  { %3014 = vmatpush3.bf16.msra.mxu0 %v3210_v3  ;;  %3045 = vmatprep.subr.bf16.mxu1 %v3231_v12 }
  0x10   :  { %3015 = vmatprep.subr.bf16.mxu0 %v3211_v5 }
  0x12   :  { %3046 = vmatpush3.bf16.msra.mxu1 %v3231_v12 }
  0x13   :  { %3016 = vmatpush3.bf16.msra.mxu0 %v3211_v5 }
  0x14   :  { %3017 = vmatprep.subr.bf16.mxu0 %v3212_v6 }
  0x17   :  { %3018 = vmatpush3.bf16.msra.mxu0 %v3212_v6 }
  0x18   :  { %3019 = vmatprep.subr.bf16.mxu0 %v3213_v8 }
  0x1b   :  { %3020 = vmatpush3.bf16.msra.mxu0 %v3213_v8 }
  0x1c   :  { %3021 = vmatprep.subr.bf16.mxu0 %v3214_v11 }
  0x1f   :  { %3022 = vmatpush3.bf16.msra.mxu0 %v3214_v11 }
  0x20   :  { %3059 = vmatprep.subr.bf16.mxu0 %v3223_v13 }
  0x22   :  { %3024 = vmatmul.mubr.bf16.vlgmr.msra.gmra.mrb[0].mxu0 %v3216_v14 }
  0x23   :  { %3027 = vmatprep.mubr.bf16.mxu0 %v3217_v15  ;;  %3060 = vmatpush3.bf16.msra.mxu0 %v3223_v13 }
  0x24   :  { %3061 = vmatprep.subr.bf16.mxu0 %v3224_v16 }
  0x27   :  { %3062 = vmatpush3.bf16.msra.mxu0 %v3224_v16 }
  0x28   :  { %3063 = vmatprep.subr.bf16.mxu0 %v3226_v17 }
  0x2a   :  { %3028 = vmatmul.mubr.bf16.gmra.mrb[4].mxu0 %v3218_v18 }
  0x2b   :  { %3031 = vmatprep.mubr.bf16.mxu0 %v3219_v19  ;;  %3064 = vmatpush3.bf16.msra.mxu0 %v3226_v17 }
  0x2c   :  { %3065 = vmatprep.subr.bf16.mxu0 %v3228_v20 }
  0x2f   :  { %3066 = vmatpush3.bf16.msra.mxu0 %v3228_v20 }
  0x30   :  { %3067 = vmatprep.subr.bf16.mxu0 %v3230_v21 }
  0x32   :  { %3032 = vmatmul.mubr.bf16.gmra.mrb[8].mxu0 %v3220_v22 }
  0x33   :  { %3035 = vmatprep.mubr.bf16.mxu0 %v3221_v23  ;;  %3068 = vmatpush3.bf16.msra.mxu0 %v3230_v21 }
  0x34   :  { %3069 = vmatprep.subr.bf16.mxu0 %v3232_v24 }
  0x37   :  { %3070 = vmatpush3.bf16.msra.mxu0 %v3232_v24 }
  0x3a   :  { %3036 = vmatmul.mubr.bf16.gmra.mrb[12].mxu0 %v3222_v25 }
  0x3b   :  { %16 = vsyncpa [#allocation3], 0  ;;  %v3233_v26 = vld [vmem:[%s4178_s3 + $0x60] sm:$0xff]   ;;  %v3234_v27 = vld [vmem:[%s4178_s3 + $0x30] sm:$0xff]   ;;  %vm3376_vm0 = vmmov 0   ;;  %vm2482_vm1 = vcmask 41984  }
  0x3c   :  { %3047 = vmatprep.subr.bf16.mxu1 %v3233_v26  ;;  %3071 = vmatprep.subr.bf16.mxu0 %v3234_v27  ;;  %v3235_v28 = vld [vmem:[%s4178_s3 + $0x68] sm:$0xff]   ;;  %v3236_v29 = vld [vmem:[%s4178_s3 + $0x38] sm:$0xff]   ;;  %v3237_v30 = vld [vmem:[%s4178_s3 + $0x70] sm:$0xff]   ;;  %s3379_s25 = smov [#allocation2]  }
  0x3d   :  { %3048 = vmatpush3.bf16.msra.mxu1 %v3233_v26  ;;  %3072 = vmatpush3.bf16.msra.mxu0 %v3234_v27  ;;  %v3238_v31 = vld [vmem:[%s4178_s3 + $0xc0] sm:$0xff]   ;;  %v3239_v32 = vld [vmem:[%s4178_s3 + $0x78] sm:$0xff]   ;;  %v3240_v52 = vld [vmem:[%s4178_s3 + $0xc8] sm:$0xff]   ;;  %s2511_s26 = sshll.u32 %s3379_s25, 4  ;;  %s2512_s26 = int_to_ptr.vmem [resolvable:$true] %s2511_s26 }
  0x3e   :  { %3049 = vmatprep.subr.bf16.mxu1 %v3235_v28  ;;  %3073 = vmatprep.subr.bf16.mxu0 %v3236_v29  ;;  %v3241_v33 = vld [vmem:[%s4178_s3 + $0x80] sm:$0xff]   ;;  %v3242_v60 = vld [vmem:[%s4178_s3 + $0xd0] sm:$0xff]   ;;  %v3243_v2 = vld [vmem:[%s4178_s3 + $0x88] sm:$0xff]   ;;  %p3356_p1 = scmp.lt.s32.totalorder %s2512_s26, %s2512_s26 }
  0x3f   :  { %v3545_v34 = vld [vmem:[%s4177_s2] ss:$0 sm:$0xff]  ;;  %v3244_v3 = vld [vmem:[%s4178_s3 + $0xd8] sm:$0xff]   ;;  %v3245_v13 = vld [vmem:[%s4178_s3 + $0x90] sm:$0xff]   ;;  %s3351_s2 = scalar_lea.vmem %s2512_s26, 32 }
  0x40   :  { %v3246_v14 = vld [vmem:[%s4178_s3 + $0xe0] sm:$0xff]   ;;  %v3247_v20 = vld [vmem:[%s4178_s3 + $0x98] sm:$0xff]   ;;  %v3248_v21 = vld [vmem:[%s4178_s3 + $0xe8] sm:$0xff]   ;;  %p3352_p0 = scmp.ne.s32.totalorder %s2512_s26, %s3351_s2  ;;  %p3357_p2 = scmp.lt.s32.totalorder %s3351_s2, %s3351_s2 }
  0x41   :  { %3050 = vmatpush3.bf16.msra.mxu1 %v3235_v28  ;;  %3074 = vmatpush3.bf16.msra.mxu0 %v3236_v29 }
  0x42   :  { %3051 = vmatprep.subr.bf16.mxu1 %v3237_v30  ;;  %3099 = vmatprep.subr.bf16.mxu0 %v3238_v31  ;;  %p3358_p3 = por %p3357_p2, %p3356_p1 }
  0x44   :  { %p3359_p4 = pnand %p3358_p3, %p3352_p0 }
  0x45   :  { %3052 = vmatpush3.bf16.msra.mxu1 %v3237_v30 }
  0x46   :  { %3053 = vmatprep.subr.bf16.mxu1 %v3239_v32 }
  0x49   :  { %3054 = vmatpush3.bf16.msra.mxu1 %v3239_v32 }
  0x4a   :  { %3079 = vmatprep.subr.bf16.mxu1 %v3241_v33 }
  0xf5   :  { %v3025_v35 = vpop.f32.mrb[0].mxu0 }
  0xf6   :  { %v218_v36 = vadd.f32 %v3025_v35, %v3545_v34  ;;  %v209_v37 = vpop.f32.mrb[1].mxu0 }
  0xf7   :  { %v210_v38 = vadd.f32 %v3545_v34, %v209_v37  ;;  %v3026_v39 = vpop.f32.mrb[2].mxu0 }
  0xf8   :  { %v221_v40 = vadd.f32 %v3026_v39, %v3545_v34  ;;  %v212_v41 = vpop.f32.mrb[3].mxu0  ;;  %v274_v43 = vmax.f32 %v218_v36, 0.0  ;;  %v3253_v39 = vld [vmem:[%s4178_s3 + $0xb0] sm:$0xff]  }
  0xf9   :  { %v213_v42 = vadd.f32 %v3545_v34, %v212_v41  ;;  %v272_v45 = vmax.f32 %v210_v38, 0.0  ;;  %v3252_v38 = vld [vmem:[%s4178_s3 + $0xf8] sm:$0xff]   ;;  %v3255_v41 = vld [vmem:[%s4180_s5] sm:$0xff]  }
  0xfa   :  { %v275_v44 = vmax.f32 %v221_v40, 0.0  ;;  %v3254_v40 = vld [vmem:[%s4178_s3 + $0xb8] sm:$0xff]  }
  0xfb   :  { %v273_v46 = vmax.f32 %v213_v42, 0.0  ;;  %v3256_v42 = vld [vmem:[%s4180_s5 + $0x40] sm:$0xff]  }
  0xfc   :  { %v289_v47 = vpack.c.bf16 %v275_v44, %v274_v43  ;;  %v3375_v43 = vmov 0.0   ;;  %v3257_v44 = vld [vmem:[%s4180_s5 + $0x8] sm:$0xff]  }
  0xfd   :  { %v288_v48 = vpack.c.bf16 %v273_v46, %v272_v45  ;;  %v3029_v49 = vpop.f32.mrb[4].mxu0  ;;  %v3258_v45 = vld [vmem:[%s4180_s5 + $0x48] sm:$0xff]   ;;  %v3259_v46 = vld [vmem:[%s4180_s5 + $0x10] sm:$0xff]  }
  0xfe   :  { %v234_v50 = vadd.f32 %v3029_v49, %v3545_v34  ;;  %v225_v51 = vpop.f32.mrb[5].mxu0  ;;  %v3262_v49 = vld [vmem:[%s4180_s5 + $0x58] sm:$0xff]  }
  0xff   :  { %v226_v53 = vadd.f32 %v3545_v34, %v225_v51  ;;  %v3030_v54 = vpop.f32.mrb[6].mxu0  ;;  %3075 = vmatprep.mubr.bf16.mxu0 %v288_v48  ;;  %v3261_v48 = vld [vmem:[%s4180_s5 + $0x18] sm:$0xff]   ;;  %v3264_v51 = vld [vmem:[%s4180_s5 + $0x60] sm:$0xff]  }
 0x100   :  { %v237_v55 = vadd.f32 %v3030_v54, %v3545_v34  ;;  %v228_v56 = vpop.f32.mrb[7].mxu0  ;;  %3076 = vmatmul.mubr.bf16.vlgmr.msra.gmra.mrb[16].mxu0 %v289_v47  ;;  %v278_v58 = vmax.f32 %v234_v50, 0.0  ;;  %v3260_v47 = vld [vmem:[%s4180_s5 + $0x50] sm:$0xff]   ;;  %v3263_v50 = vld [vmem:[%s4180_s5 + $0x20] sm:$0xff]  }
 0x101   :  { %v229_v57 = vadd.f32 %v3545_v34, %v228_v56  ;;  %3100 = vmatpush3.bf16.msra.mxu0 %v3238_v31  ;;  %v276_v61 = vmax.f32 %v226_v53, 0.0  ;;  %v3249_v31 = vld [vmem:[%s4178_s3 + $0xa0] sm:$0xff]   ;;  %v3266_v53 = vld [vmem:[%s4180_s5 + $0x68] sm:$0xff]   ;;  %v3267_v54 = vld [vmem:[%s4180_s5 + $0x30] sm:$0xff]  }
 0x102   :  { %v279_v59 = vmax.f32 %v237_v55, 0.0  ;;  %3101 = vmatprep.subr.bf16.mxu0 %v3240_v52  ;;  %v3268_v55 = vld [vmem:[%s4180_s5 + $0x70] sm:$0xff]   ;;  %v3269_v56 = vld [vmem:[%s4180_s5 + $0x38] sm:$0xff]  }
 0x103   :  { %v277_v62 = vmax.f32 %v229_v57, 0.0  ;;  %v3270_v57 = vld [vmem:[%s4180_s5 + $0x78] sm:$0xff]  }
 0x104   :  { %v291_v63 = vpack.c.bf16 %v279_v59, %v278_v58 }
 0x105   :  { %v290_v0 = vpack.c.bf16 %v277_v62, %v276_v61  ;;  %3102 = vmatpush3.bf16.msra.mxu0 %v3240_v52  ;;  %v3033_v1 = vpop.f32.mrb[8].mxu0  ;;  %v3265_v52 = vld [vmem:[%s4180_s5 + $0x28] sm:$0xff]  }
 0x106   :  { %3103 = vmatprep.subr.bf16.mxu0 %v3242_v60  ;;  %v250_v4 = vadd.f32 %v3033_v1, %v3545_v34  ;;  %v241_v5 = vpop.f32.mrb[9].mxu0 }
 0x107   :  { %3055 = vmatprep.mubr.bf16.mxu1 %v290_v0  ;;  %v242_v6 = vadd.f32 %v3545_v34, %v241_v5  ;;  %v3034_v7 = vpop.f32.mrb[10].mxu0 }
 0x108   :  { %3056 = vmatmul.mubr.bf16.vlgmr.msra.gmra.mrb[0].mxu1 %v291_v63  ;;  %v282_v8 = vmax.f32 %v250_v4, 0.0  ;;  %v253_v9 = vadd.f32 %v3034_v7, %v3545_v34  ;;  %v244_v10 = vpop.f32.mrb[11].mxu0 }
 0x109   :  { %3080 = vmatpush3.bf16.msra.mxu1 %v3241_v33  ;;  %3104 = vmatpush3.bf16.msra.mxu0 %v3242_v60  ;;  %v280_v11 = vmax.f32 %v242_v6, 0.0  ;;  %v245_v12 = vadd.f32 %v3545_v34, %v244_v10  ;;  %v3250_v33 = vld [vmem:[%s4178_s3 + $0xf0] sm:$0xff]  }
 0x10a   :  { %3081 = vmatprep.subr.bf16.mxu1 %v3243_v2  ;;  %3105 = vmatprep.subr.bf16.mxu0 %v3244_v3  ;;  %v283_v15 = vmax.f32 %v253_v9, 0.0 }
 0x10b   :  { %v281_v16 = vmax.f32 %v245_v12, 0.0  ;;  %v2616_v12 = vld [vmem:[%s4179_s4] ss:$0 sm:$0xff] }
 0x10c   :  { %v293_v17 = vpack.c.bf16 %v283_v15, %v282_v8 }
 0x10d   :  { %3082 = vmatpush3.bf16.msra.mxu1 %v3243_v2  ;;  %3106 = vmatpush3.bf16.msra.mxu0 %v3244_v3  ;;  %v292_v18 = vpack.c.bf16 %v281_v16, %v280_v11  ;;  %v3037_v19 = vpop.f32.mrb[12].mxu0 }
 0x10e   :  { %3083 = vmatprep.subr.bf16.mxu1 %v3245_v13  ;;  %3107 = vmatprep.subr.bf16.mxu0 %v3246_v14  ;;  %v266_v22 = vadd.f32 %v3037_v19, %v3545_v34  ;;  %v257_v23 = vpop.f32.mrb[13].mxu0 }
 0x10f   :  { %v258_v24 = vadd.f32 %v3545_v34, %v257_v23  ;;  %v3038_v25 = vpop.f32.mrb[14].mxu0  ;;  %3095 = vmatprep.mubr.bf16.mxu1 %v292_v18  ;;  %v3272_v23 = vld [vmem:[%s4180_s5 + $0x80] sm:$0xff]  }
 0x110   :  { %v286_v26 = vmax.f32 %v266_v22, 0.0  ;;  %v269_v27 = vadd.f32 %v3038_v25, %v3545_v34  ;;  %v260_v28 = vpop.f32.mrb[15].mxu0  ;;  %v3273_v25 = vld [vmem:[%s4180_s5 + $0xc8] sm:$0xff]  }
 0x111   :  { %3084 = vmatpush3.bf16.msra.mxu1 %v3245_v13  ;;  %3108 = vmatpush3.bf16.msra.mxu0 %v3246_v14  ;;  %v284_v29 = vmax.f32 %v258_v24, 0.0  ;;  %v261_v30 = vadd.f32 %v3545_v34, %v260_v28  ;;  %v3251_v34 = vld [vmem:[%s4178_s3 + $0xa8] sm:$0xff]   ;;  %v3276_v28 = vld [vmem:[%s4180_s5 + $0x90] sm:$0xff]  }
 0x112   :  { %3085 = vmatprep.subr.bf16.mxu1 %v3247_v20  ;;  %3109 = vmatprep.subr.bf16.mxu0 %v3248_v21  ;;  %v287_v32 = vmax.f32 %v269_v27, 0.0  ;;  %v3275_v27 = vld [vmem:[%s4180_s5 + $0xd0] sm:$0xff]  }
 0x113   :  { %v285_v35 = vmax.f32 %v261_v30, 0.0  ;;  %v3278_v30 = vld [vmem:[%s4180_s5 + $0x98] sm:$0xff]  }
 0x114   :  { %v295_v36 = vpack.c.bf16 %v287_v32, %v286_v26  ;;  %v3274_v26 = vld [vmem:[%s4180_s5 + $0x88] sm:$0xff]   ;;  %v3280_v32 = vld [vmem:[%s4180_s5 + $0xa0] sm:$0xff]  }
 0x115   :  { %3086 = vmatpush3.bf16.msra.mxu1 %v3247_v20  ;;  %3110 = vmatpush3.bf16.msra.mxu0 %v3248_v21  ;;  %v294_v37 = vpack.c.bf16 %v285_v35, %v284_v29  ;;  %v3271_v21 = vld [vmem:[%s4180_s5 + $0xc0] sm:$0xff]   ;;  %v3277_v29 = vld [vmem:[%s4180_s5 + $0xd8] sm:$0xff]   ;;  %v3282_v35 = vld [vmem:[%s4180_s5 + $0xa8] sm:$0xff]  }
 0x116   :  { %3087 = vmatprep.subr.bf16.mxu1 %v3249_v31  ;;  %3111 = vmatprep.subr.bf16.mxu0 %v3250_v33 }
 0x117   :  { %3115 = vmatprep.mubr.bf16.mxu0 %v294_v37  ;;  %v3284_v37 = vld [vmem:[%s4180_s5 + $0xb0] sm:$0xff]  }
 0x119   :  { %3088 = vmatpush3.bf16.msra.mxu1 %v3249_v31  ;;  %3112 = vmatpush3.bf16.msra.mxu0 %v3250_v33  ;;  %v3279_v31 = vld [vmem:[%s4180_s5 + $0xe0] sm:$0xff]   ;;  %v3281_v33 = vld [vmem:[%s4180_s5 + $0xe8] sm:$0xff]  }
 0x11a   :  { %3089 = vmatprep.subr.bf16.mxu1 %v3251_v34  ;;  %3113 = vmatprep.subr.bf16.mxu0 %v3252_v38 }
 0x11d   :  { %3090 = vmatpush3.bf16.msra.mxu1 %v3251_v34  ;;  %3114 = vmatpush3.bf16.msra.mxu0 %v3252_v38  ;;  %v3285_v34 = vld [vmem:[%s4180_s5 + $0xf8] sm:$0xff]  }
 0x11e   :  { %3091 = vmatprep.subr.bf16.mxu1 %v3253_v39  ;;  %3139 = vmatprep.subr.bf16.mxu0 %v3375_v43  ;;  %v3286_v38 = vld [vmem:[%s4180_s5 + $0xb8] sm:$0xff]  }
 0x120   :  { %3116 = vmatmul.mubr.bf16.vlgmr.msra.gmra.mrb[20].mxu0 %v295_v36  ;;  %v3283_v36 = vld [vmem:[%s4180_s5 + $0xf0] sm:$0xff]  }
 0x121   :  { %3092 = vmatpush3.bf16.msra.mxu1 %v3253_v39  ;;  %3140 = vmatpush3.bf16.msra.mxu0 %v3255_v41  ;;  %v1197_v41 = vld [vmem:[%s4182_s7] sm:$0xff] }
 0x122   :  { %3093 = vmatprep.subr.bf16.mxu1 %v3254_v40  ;;  %3141 = vmatprep.subr.bf16.mxu0 %v3375_v43 }
 0x123   :  { %3155 = vmatprep.mubr.msk.bf16.mxu0 %vm3376_vm0, %v3375_v43 }
 0x125   :  { %3094 = vmatpush3.bf16.msra.mxu1 %v3254_v40  ;;  %3142 = vmatpush3.bf16.msra.mxu0 %v3257_v44  ;;  %v1198_v44 = vld [vmem:[%s4182_s7 + $0x8] sm:$0xff] }
 0x126   :  { %3119 = vmatprep.subr.bf16.mxu1 %v3375_v43  ;;  %3143 = vmatprep.subr.bf16.mxu0 %v3375_v43 }
 0x128   :  { %3096 = vmatmul.mubr.bf16.vlgmr.msra.gmra.mrb[4].mxu1 %v293_v17 }
 0x129   :  { %3120 = vmatpush3.bf16.msra.mxu1 %v3256_v42  ;;  %3144 = vmatpush3.bf16.msra.mxu0 %v3259_v46  ;;  %v1201_v42 = vld [vmem:[%s4182_s7 + $0x20] sm:$0xff]  ;;  %v1202_v46 = vld [vmem:[%s4182_s7 + $0x28] sm:$0xff] }
 0x12a   :  { %3121 = vmatprep.subr.bf16.mxu1 %v3375_v43  ;;  %3145 = vmatprep.subr.bf16.mxu0 %v3375_v43 }
 0x12b   :  { %3135 = vmatprep.mubr.msk.bf16.mxu1 %vm3376_vm0, %v3375_v43 }
 0x12d   :  { %3122 = vmatpush3.bf16.msra.mxu1 %v3258_v45  ;;  %3146 = vmatpush3.bf16.msra.mxu0 %v3261_v48  ;;  %v2698_v45 = vcombine.low %v1197_v41, %v1201_v42  ;;  %v1209_v48 = vld [vmem:[%s4182_s7 + $0x60] sm:$0xff] }
 0x12e   :  { %3123 = vmatprep.subr.bf16.mxu1 %v3375_v43  ;;  %3147 = vmatprep.subr.bf16.mxu0 %v3375_v43 }
 0x131   :  { %3124 = vmatpush3.bf16.msra.mxu1 %v3260_v47  ;;  %3148 = vmatpush3.bf16.msra.mxu0 %v3263_v50  ;;  %v1205_v47 = vld [vmem:[%s4182_s7 + $0x40] sm:$0xff]  ;;  %v2701_v50 = vcombine.high %v1198_v44, %v1202_v46 }
 0x132   :  { %3125 = vmatprep.subr.bf16.mxu1 %v3375_v43  ;;  %3149 = vmatprep.subr.bf16.mxu0 %v3375_v43 }
 0x135   :  { %3126 = vmatpush3.bf16.msra.mxu1 %v3262_v49  ;;  %3150 = vmatpush3.bf16.msra.mxu0 %v3265_v52  ;;  %v2700_v49 = vcombine.low %v1198_v44, %v1202_v46  ;;  %v1206_v52 = vld [vmem:[%s4182_s7 + $0x48] sm:$0xff]  ;;  %v1200_v44 = vld [vmem:[%s4182_s7 + $0x18] sm:$0xff] }
 0x136   :  { %3127 = vmatprep.subr.bf16.mxu1 %v3375_v43  ;;  %3151 = vmatprep.subr.bf16.mxu0 %v3375_v43 }
 0x139   :  { %3128 = vmatpush3.bf16.msra.mxu1 %v3264_v51  ;;  %3152 = vmatpush3.bf16.msra.mxu0 %v3267_v54  ;;  %v2707_v51 = vcombine.high %v1205_v47, %v1209_v48  ;;  %v1213_v54 = vld [vmem:[%s4182_s7 + $0x80] sm:$0xff] }
 0x13a   :  { %3129 = vmatprep.subr.bf16.mxu1 %v3375_v43  ;;  %3153 = vmatprep.subr.bf16.mxu0 %v3375_v43 }
 0x13d   :  { %3130 = vmatpush3.bf16.msra.mxu1 %v3266_v53  ;;  %3154 = vmatpush3.bf16.msra.mxu0 %v3269_v56  ;;  %v1210_v53 = vld [vmem:[%s4182_s7 + $0x68] sm:$0xff]  ;;  %v1217_v56 = vld [vmem:[%s4182_s7 + $0xa0] sm:$0xff] }
 0x13e   :  { %3131 = vmatprep.subr.bf16.mxu1 %v3375_v43  ;;  %3179 = vmatprep.subr.bf16.mxu0 %v3375_v43 }
 0x141   :  { %3132 = vmatpush3.bf16.msra.mxu1 %v3268_v55  ;;  %v2709_v55 = vcombine.high %v1206_v52, %v1210_v53 }
 0x142   :  { %3133 = vmatprep.subr.bf16.mxu1 %v3375_v43 }
 0x145   :  { %3134 = vmatpush3.bf16.msra.mxu1 %v3270_v57  ;;  %v1214_v57 = vld [vmem:[%s4182_s7 + $0x88] sm:$0xff] }
 0x146   :  { %3159 = vmatprep.subr.bf16.mxu1 %v3375_v43 }
 0x1d3   :  { %v3077_v58 = vpop.f32.mrb[16].mxu0 }
 0x1d4   :  { %v506_v59 = vpop.f32.mrb[17].mxu0  ;;  %v1218_v58 = vld [vmem:[%s4182_s7 + $0xa8] sm:$0xff] }
 0x1d5   :  { %v3078_v60 = vpop.f32.mrb[18].mxu0 }
 0x1d6   :  { %v509_v61 = vpop.f32.mrb[19].mxu0  ;;  %v2708_v60 = vcombine.low %v1206_v52, %v1210_v53 }
 0x1db   :  { %v3057_v62 = vpop.f32.mrb[0].mxu1 }
 0x1dc   :  { %v411_v63 = vpop.f32.mrb[1].mxu1  ;;  %v2717_v62 = vcombine.high %v1214_v57, %v1218_v58 }
 0x1dd   :  { %v507_v0 = vadd.f32 %v506_v59, %v411_v63  ;;  %v3058_v1 = vpop.f32.mrb[2].mxu1  ;;  %v2706_v59 = vcombine.low %v1205_v47, %v1209_v48  ;;  %v1221_v63 = vld [vmem:[%s4182_s7 + $0xc0] sm:$0xff] }
 0x1de   :  { %v414_v2 = vpop.f32.mrb[3].mxu1  ;;  %v1222_v1 = vld [vmem:[%s4182_s7 + $0xc8] sm:$0xff] }
 0x1df   :  { %v510_v3 = vadd.f32 %v509_v61, %v414_v2  ;;  %v2715_v61 = vcombine.high %v1213_v54, %v1217_v56  ;;  %v1226_v2 = vld [vmem:[%s4182_s7 + $0xe8] sm:$0xff] }
 0x1f3   :  { %v3117_v4 = vpop.f32.mrb[20].mxu0 }
 0x1f4   :  { %v732_v5 = vpop.f32.mrb[21].mxu0  ;;  %v2716_v4 = vcombine.low %v1214_v57, %v1218_v58 }
 0x1f5   :  { %v3118_v6 = vpop.f32.mrb[22].mxu0 }
 0x1f6   :  { %v735_v7 = vpop.f32.mrb[23].mxu0  ;;  %v2725_v6 = vcombine.high %v1222_v1, %v1226_v2 }
 0x1fb   :  { %v3097_v8 = vpop.f32.mrb[4].mxu1 }
 0x1fc   :  { %v618_v9 = vpop.f32.mrb[5].mxu1  ;;  %v1233_v8 = vld [vmem:[%s4182_s7 + $0x120] sm:$0xff] }
 0x1fd   :  { %v631_v10 = vadd.f32 %v618_v9, %v507_v0  ;;  %v3098_v11 = vpop.f32.mrb[6].mxu1  ;;  %v1225_v0 = vld [vmem:[%s4182_s7 + $0xe0] sm:$0xff]  ;;  %v1230_v9 = vld [vmem:[%s4182_s7 + $0x108] sm:$0xff] }
 0x1fe   :  { %v621_v13 = vpop.f32.mrb[7].mxu1  ;;  %v2722_v11 = vcombine.low %v1221_v63, %v1225_v0 }
 0x1ff   :  { %v745_v14 = vadd.f32 %v732_v5, %v631_v10  ;;  %v632_v15 = vadd.f32 %v621_v13, %v510_v3  ;;  %v2714_v3 = vcombine.low %v1213_v54, %v1217_v56  ;;  %v2723_v5 = vcombine.high %v1221_v63, %v1225_v0  ;;  %v1234_v10 = vld [vmem:[%s4182_s7 + $0x128] sm:$0xff] }
 0x201   :  { %v754_v16 = vadd.f32 %v2616_v12, %v745_v14  ;;  %v746_v17 = vadd.f32 %v735_v7, %v632_v15  ;;  %v1229_v7 = vld [vmem:[%s4182_s7 + $0x100] sm:$0xff]  ;;  %v2733_v14 = vcombine.high %v1230_v9, %v1234_v10 }
 0x202   :  { %v2731_v13 = vcombine.high %v1229_v7, %v1233_v8  ;;  %v2730_v15 = vcombine.low %v1229_v7, %v1233_v8  ;;  %v1207_v7 = vld [vmem:[%s4182_s7 + $0x50] sm:$0xff] }
 0x203   :  { %v755_v18 = vadd.f32 %v2616_v12, %v746_v17  ;;  %v756_v19 = vmax.f32 %v754_v16, 0.0  ;;  %v2724_v12 = vcombine.low %v1222_v1, %v1226_v2  ;;  %v2732_v16 = vcombine.low %v1230_v9, %v1234_v10  ;;  %v1237_v17 = vld [vmem:[%s4182_s7 + $0x140] sm:$0xff]  ;;  %v1211_v8 = vld [vmem:[%s4182_s7 + $0x70] sm:$0xff]  ;;  %v1208_v9 = vld [vmem:[%s4182_s7 + $0x58] sm:$0xff] }
 0x204   :  { %v2697_v2 = vld [vmem:[%s4181_s6] ss:$0 sm:$0xff]  ;;  %v1212_v10 = vld [vmem:[%s4182_s7 + $0x78] sm:$0xff] }
 0x205   :  { %v757_v20 = vmax.f32 %v755_v18, 0.0  ;;  %v1241_v18 = vld [vmem:[%s4182_s7 + $0x160] sm:$0xff] }
 0x207   :  { %v758_v22 = vpack.c.bf16 %v757_v20, %v756_v19  ;;  %v1238_v19 = vld [vmem:[%s4182_s7 + $0x148] sm:$0xff]  ;;  %v2739_v20 = vcombine.high %v1237_v17, %v1241_v18 }
 0x209   :  { %3156 = vmatmul.mubr.bf16.vlgmr.msra.gmra.mrb[24].mxu0 %v758_v22  ;;  %v793_v24 = vrot.slane %v758_v22, 1  ;;  %v1096_v39 = vrot.slane %v758_v22, 3  ;;  %v988_v40 = vrot.slane %v758_v22, 2  ;;  %v2738_v22 = vcombine.low %v1237_v17, %v1241_v18  ;;  %v1216_v17 = vld [vmem:[%s4182_s7 + $0x98] sm:$0xff] }
 0x20a   :  { %3180 = vmatpush3.bf16.msra.mxu0 %v3271_v21  ;;  %3195 = vmatprep.mubr.msk.bf16.mxu0 %vm3376_vm0, %v3375_v43  ;;  %v1242_v21 = vld [vmem:[%s4182_s7 + $0x168] sm:$0xff]  ;;  %v1220_v18 = vld [vmem:[%s4182_s7 + $0xb8] sm:$0xff] }
 0x20b   :  { %3136 = vmatmul.mubr.bf16.vlgmr.msra.gmra.mrb[8].mxu1 %v793_v24  ;;  %3181 = vmatprep.subr.bf16.mxu0 %v3375_v43  ;;  %v2741_v24 = vcombine.high %v1238_v19, %v1242_v21 }
 0x20c   :  { %3160 = vmatpush3.bf16.msra.mxu1 %v3272_v23  ;;  %3175 = vmatprep.mubr.msk.bf16.mxu1 %vm3376_vm0, %v3375_v43  ;;  %v2740_v23 = vcombine.low %v1238_v19, %v1242_v21  ;;  %v2710_v19 = vcombine.low %v1207_v7, %v1211_v8 }
 0x20d   :  { %3161 = vmatprep.subr.bf16.mxu1 %v3375_v43 }
 0x20e   :  { %3182 = vmatpush3.bf16.msra.mxu0 %v3273_v25  ;;  %v1245_v25 = vld [vmem:[%s4182_s7 + $0x180] sm:$0xff] }
 0x20f   :  { %3183 = vmatprep.subr.bf16.mxu0 %v3375_v43 }
 0x210   :  { %3162 = vmatpush3.bf16.msra.mxu1 %v3274_v26  ;;  %v1249_v26 = vld [vmem:[%s4182_s7 + $0x1a0] sm:$0xff] }
 0x211   :  { %3163 = vmatprep.subr.bf16.mxu1 %v3375_v43 }
 0x212   :  { %3184 = vmatpush3.bf16.msra.mxu0 %v3275_v27  ;;  %v1246_v27 = vld [vmem:[%s4182_s7 + $0x188] sm:$0xff] }
 0x213   :  { %3185 = vmatprep.subr.bf16.mxu0 %v3375_v43 }
 0x214   :  { %3164 = vmatpush3.bf16.msra.mxu1 %v3276_v28  ;;  %v2747_v28 = vcombine.high %v1245_v25, %v1249_v26 }
 0x215   :  { %3165 = vmatprep.subr.bf16.mxu1 %v3375_v43 }
 0x216   :  { %3186 = vmatpush3.bf16.msra.mxu0 %v3277_v29  ;;  %v1250_v29 = vld [vmem:[%s4182_s7 + $0x1a8] sm:$0xff] }
 0x217   :  { %3187 = vmatprep.subr.bf16.mxu0 %v3375_v43 }
 0x218   :  { %3166 = vmatpush3.bf16.msra.mxu1 %v3278_v30  ;;  %v2746_v30 = vcombine.low %v1245_v25, %v1249_v26  ;;  %v1224_v25 = vld [vmem:[%s4182_s7 + $0xd8] sm:$0xff] }
 0x219   :  { %3167 = vmatprep.subr.bf16.mxu1 %v3375_v43  ;;  %v1228_v26 = vld [vmem:[%s4182_s7 + $0xf8] sm:$0xff] }
 0x21a   :  { %3188 = vmatpush3.bf16.msra.mxu0 %v3279_v31  ;;  %v2748_v31 = vcombine.low %v1246_v27, %v1250_v29 }
 0x21b   :  { %3189 = vmatprep.subr.bf16.mxu0 %v3375_v43 }
 0x21c   :  { %3168 = vmatpush3.bf16.msra.mxu1 %v3280_v32  ;;  %v2749_v32 = vcombine.high %v1246_v27, %v1250_v29 }
 0x21d   :  { %3169 = vmatprep.subr.bf16.mxu1 %v3375_v43 }
 0x21e   :  { %3190 = vmatpush3.bf16.msra.mxu0 %v3281_v33  ;;  %v1253_v33 = vld [vmem:[%s4182_s7 + $0x1c0] sm:$0xff] }
 0x21f   :  { %3191 = vmatprep.subr.bf16.mxu0 %v3375_v43 }
 0x220   :  { %3170 = vmatpush3.bf16.msra.mxu1 %v3282_v35  ;;  %v1257_v35 = vld [vmem:[%s4182_s7 + $0x1e0] sm:$0xff] }
 0x221   :  { %3171 = vmatprep.subr.bf16.mxu1 %v3375_v43 }
 0x222   :  { %3192 = vmatpush3.bf16.msra.mxu0 %v3283_v36  ;;  %v2755_v36 = vcombine.high %v1253_v33, %v1257_v35 }
 0x223   :  { %3193 = vmatprep.subr.bf16.mxu0 %v3375_v43 }
 0x224   :  { %3172 = vmatpush3.bf16.msra.mxu1 %v3284_v37  ;;  %v1254_v37 = vld [vmem:[%s4182_s7 + $0x1c8] sm:$0xff] }
 0x225   :  { %3173 = vmatprep.subr.bf16.mxu1 %v3375_v43  ;;  %v2699_v43 = vcombine.high %v1197_v41, %v1201_v42  ;;  %v1199_v41 = vld [vmem:[%s4182_s7 + $0x10] sm:$0xff] }
 0x226   :  { %3194 = vmatpush3.bf16.msra.mxu0 %v3285_v34  ;;  %v1258_v34 = vld [vmem:[%s4182_s7 + $0x1e8] sm:$0xff]  ;;  %v1203_v42 = vld [vmem:[%s4182_s7 + $0x30] sm:$0xff] }
 0x227   :  { %1664 = vmatprep.subr.bf16.mxu0 %v2701_v50  ;;  %v2702_v46 = vcombine.low %v1199_v41, %v1203_v42 }
 0x228   :  { %3174 = vmatpush3.bf16.msra.mxu1 %v3286_v38  ;;  %v2754_v38 = vcombine.low %v1253_v33, %v1257_v35  ;;  %v1232_v33 = vld [vmem:[%s4182_s7 + $0x118] sm:$0xff] }
 0x229   :  { %3196 = vmatmul.mubr.bf16.vlgmr.msra.gmra.mrb[28].mxu0 %v1096_v39  ;;  %1623 = vmatprep.subr.bf16.mxu1 %v2699_v43  ;;  %v2756_v39 = vcombine.low %v1254_v37, %v1258_v34  ;;  %v1204_v43 = vld [vmem:[%s4182_s7 + $0x38] sm:$0xff] }
 0x22a   :  { %1665 = vmatpush1.bf16.msra.mxu0 %v2700_v49  ;;  %v2704_v47 = vcombine.low %v1200_v44, %v1204_v43  ;;  %v2705_v48 = vcombine.high %v1200_v44, %v1204_v43  ;;  %v3377_v49 = vmov 0   ;;  %v1236_v35 = vld [vmem:[%s4182_s7 + $0x138] sm:$0xff] }
 0x22b   :  { %3176 = vmatmul.mubr.bf16.vlgmr.msra.gmra.mrb[12].mxu1 %v988_v40  ;;  %1666 = vmatprep.subr.bf16.mxu0 %v2709_v55  ;;  %v2757_v40 = vcombine.high %v1254_v37, %v1258_v34  ;;  %v2728_v37 = vcombine.low %v1224_v25, %v1228_v26 }
 0x22c   :  { %1624 = vmatpush1.bf16.msra.mxu1 %v2698_v45  ;;  %v2703_v45 = vcombine.high %v1199_v41, %v1203_v42  ;;  %1655 = vmatprep.mubr.bf16.mxu1 %v3377_v49  ;;  %v1240_v41 = vld [vmem:[%s4182_s7 + $0x158] sm:$0xff] }
 0x22d   :  { %1625 = vmatprep.subr.bf16.mxu1 %v2707_v51  ;;  %1696 = vmatprep.mubr.bf16.mxu0 %v3377_v49  ;;  %v1244_v42 = vld [vmem:[%s4182_s7 + $0x178] sm:$0xff] }
 0x22e   :  { %1667 = vmatpush1.bf16.msra.mxu0 %v2708_v60 }
 0x22f   :  { %1668 = vmatprep.subr.bf16.mxu0 %v2717_v62 }
 0x230   :  { %1626 = vmatpush1.bf16.msra.mxu1 %v2706_v59 }
 0x231   :  { %1627 = vmatprep.subr.bf16.mxu1 %v2715_v61 }
 0x232   :  { %1669 = vmatpush1.bf16.msra.mxu0 %v2716_v4 }
 0x233   :  { %1670 = vmatprep.subr.bf16.mxu0 %v2725_v6 }
 0x234   :  { %1628 = vmatpush1.bf16.msra.mxu1 %v2714_v3 }
 0x235   :  { %1629 = vmatprep.subr.bf16.mxu1 %v2723_v5 }
 0x236   :  { %1671 = vmatpush1.bf16.msra.mxu0 %v2724_v12 }
 0x237   :  { %1672 = vmatprep.subr.bf16.mxu0 %v2733_v14  ;;  %v2713_v14 = vcombine.high %v1208_v9, %v1212_v10 }
 0x238   :  { %1630 = vmatpush1.bf16.msra.mxu1 %v2722_v11 }
 0x239   :  { %1631 = vmatprep.subr.bf16.mxu1 %v2731_v13  ;;  %v2711_v13 = vcombine.high %v1207_v7, %v1211_v8  ;;  %v3293_v7 = vld [vmem:[%s4184_s9 + $0x8] sm:$0xff]  }
 0x23a   :  { %1673 = vmatpush1.bf16.msra.mxu0 %v2732_v16  ;;  %v1219_v16 = vld [vmem:[%s4182_s7 + $0xb0] sm:$0xff]  ;;  %v3294_v8 = vld [vmem:[%s4184_s9 + $0x88] sm:$0xff]  }
 0x23b   :  { %1674 = vmatprep.subr.bf16.mxu0 %v2741_v24  ;;  %v1227_v24 = vld [vmem:[%s4182_s7 + $0xf0] sm:$0xff] }
 0x23c   :  { %1632 = vmatpush1.bf16.msra.mxu1 %v2730_v15  ;;  %v1215_v15 = vld [vmem:[%s4182_s7 + $0x90] sm:$0xff] }
 0x23d   :  { %1633 = vmatprep.subr.bf16.mxu1 %v2739_v20  ;;  %v2712_v20 = vcombine.low %v1208_v9, %v1212_v10  ;;  %v2719_v21 = vcombine.high %v1215_v15, %v1219_v16  ;;  %v2718_v27 = vcombine.low %v1215_v15, %v1219_v16  ;;  %v3295_v9 = vld [vmem:[%s4184_s9 + $0x50] sm:$0xff]   ;;  %v3301_v15 = vld [vmem:[%s4184_s9 + $0x18] sm:$0xff]  }
 0x23e   :  { %1675 = vmatpush1.bf16.msra.mxu0 %v2740_v23  ;;  %v1223_v23 = vld [vmem:[%s4182_s7 + $0xd0] sm:$0xff]  ;;  %v3302_v16 = vld [vmem:[%s4184_s9 + $0x98] sm:$0xff]  }
 0x23f   :  { %1676 = vmatprep.subr.bf16.mxu0 %v2749_v32  ;;  %v2727_v29 = vcombine.high %v1223_v23, %v1227_v24  ;;  %v1235_v32 = vld [vmem:[%s4182_s7 + $0x130] sm:$0xff] }
 0x240   :  { %1634 = vmatpush1.bf16.msra.mxu1 %v2738_v22  ;;  %v2721_v22 = vcombine.high %v1216_v17, %v1220_v18  ;;  %v3296_v10 = vld [vmem:[%s4184_s9 + $0xd0] sm:$0xff]  }
 0x241   :  { %1635 = vmatprep.subr.bf16.mxu1 %v2747_v28  ;;  %v2720_v28 = vcombine.low %v1216_v17, %v1220_v18  ;;  %v3303_v17 = vld [vmem:[%s4184_s9 + $0x60] sm:$0xff]  }
 0x242   :  { %1677 = vmatpush1.bf16.msra.mxu0 %v2748_v31  ;;  %v1231_v31 = vld [vmem:[%s4182_s7 + $0x110] sm:$0xff]  ;;  %v3304_v18 = vld [vmem:[%s4184_s9 + $0xe0] sm:$0xff]  }
 0x243   :  { %1678 = vmatprep.subr.bf16.mxu0 %v2757_v40  ;;  %v2735_v34 = vcombine.high %v1231_v31, %v1235_v32  ;;  %v1243_v40 = vld [vmem:[%s4182_s7 + $0x170] sm:$0xff]  ;;  %v2734_v44 = vcombine.low %v1231_v31, %v1235_v32  ;;  %v3317_v31 = vld [vmem:[%s4184_s9 + $0x38] sm:$0xff]  }
 0x244   :  { %1636 = vmatpush1.bf16.msra.mxu1 %v2746_v30  ;;  %v2729_v30 = vcombine.high %v1224_v25, %v1228_v26  ;;  %v3311_v25 = vld [vmem:[%s4184_s9 + $0x70] sm:$0xff]   ;;  %v3318_v32 = vld [vmem:[%s4184_s9 + $0xb8] sm:$0xff]  }
 0x245   :  { %1637 = vmatprep.subr.bf16.mxu1 %v2755_v36  ;;  %v2726_v36 = vcombine.low %v1223_v23, %v1227_v24  ;;  %v3309_v23 = vld [vmem:[%s4184_s9 + $0x28] sm:$0xff]   ;;  %v3312_v26 = vld [vmem:[%s4184_s9 + $0xf0] sm:$0xff]  }
 0x246   :  { %1679 = vmatpush1.bf16.msra.mxu0 %v2756_v39  ;;  %v1239_v39 = vld [vmem:[%s4182_s7 + $0x150] sm:$0xff]  ;;  %v3310_v24 = vld [vmem:[%s4184_s9 + $0xa8] sm:$0xff]  }
 0x247   :  { %1746 = vmatprep.subr.bf16.mxu0 %v2705_v48  ;;  %v2743_v43 = vcombine.high %v1239_v39, %v1243_v40  ;;  %v1251_v48 = vld [vmem:[%s4182_s7 + $0x1b0] sm:$0xff] }
 0x248   :  { %1638 = vmatpush1.bf16.msra.mxu1 %v2754_v38  ;;  %v2737_v38 = vcombine.high %v1232_v33, %v1236_v35 }
 0x249   :  { %1705 = vmatprep.subr.bf16.mxu1 %v2703_v45  ;;  %v2736_v45 = vcombine.low %v1232_v33, %v1236_v35  ;;  %v3319_v33 = vld [vmem:[%s4184_s9 + $0x140] sm:$0xff]  }
 0x24a   :  { %v3320_v35 = vld [vmem:[%s4184_s9 + $0x1c0] sm:$0xff]  }
 0x2dc   :  { %v965_v50 = vpop.f32.mrb[24].mxu0 }
 0x2dd   :  { %v3157_v51 = vpop.f32.mrb[25].mxu0 }
 0x2de   :  { %v877_v52 = vpop.f32.mrb[8].mxu1  ;;  %v968_v53 = vpop.f32.mrb[26].mxu0  ;;  %v2742_v51 = vcombine.low %v1239_v39, %v1243_v40  ;;  %v4054_v39 = vld [vmem:[%s4183_s8] sm:$0xff] }
 0x2df   :  { %v966_v54 = vadd.f32 %v965_v50, %v877_v52  ;;  %v3137_v55 = vpop.f32.mrb[9].mxu1  ;;  %v3158_v56 = vpop.f32.mrb[27].mxu0  ;;  %v1252_v50 = vld [vmem:[%s4182_s7 + $0x1b8] sm:$0xff]  ;;  %v2744_v52 = vcombine.low %v1240_v41, %v1244_v42 }
 0x2e0   :  { %v880_v57 = vpop.f32.mrb[10].mxu1  ;;  %v1255_v55 = vld [vmem:[%s4182_s7 + $0x1d0] sm:$0xff] }
 0x2e1   :  { %v3138_v58 = vpop.f32.mrb[11].mxu1  ;;  %v1259_v56 = vld [vmem:[%s4182_s7 + $0x1f0] sm:$0xff]  ;;  %v1256_v57 = vld [vmem:[%s4182_s7 + $0x1d8] sm:$0xff] }
 0x2e2   :  { %v1260_v58 = vld [vmem:[%s4182_s7 + $0x1f8] sm:$0xff] }
 0x2fc   :  { %v1180_v59 = vpop.f32.mrb[28].mxu0 }
 0x2fd   :  { %v3197_v60 = vpop.f32.mrb[29].mxu0 }
 0x2fe   :  { %v1072_v61 = vpop.f32.mrb[12].mxu1  ;;  %v1183_v62 = vpop.f32.mrb[30].mxu0 }
 0x2ff   :  { %v1078_v63 = vadd.f32 %v1072_v61, %v966_v54  ;;  %v3177_v0 = vpop.f32.mrb[13].mxu1  ;;  %v3198_v1 = vpop.f32.mrb[31].mxu0  ;;  %v2759_v61 = vcombine.high %v1255_v55, %v1259_v56  ;;  %v2761_v62 = vcombine.high %v1256_v57, %v1260_v58 }
 0x300   :  { %v1075_v3 = vpop.f32.mrb[14].mxu1  ;;  %v2760_v0 = vcombine.low %v1256_v57, %v1260_v58  ;;  %v3287_v1 = vld [vmem:[%s4184_s9 + $0x40] sm:$0xff]  }
 0x301   :  { %v1186_v4 = vadd.f32 %v1180_v59, %v1078_v63  ;;  %v3178_v5 = vpop.f32.mrb[15].mxu1  ;;  %v2758_v63 = vcombine.low %v1255_v55, %v1259_v56  ;;  %v3289_v3 = vld [vmem:[%s4184_s9] sm:$0xff]  }
 0x302   :  { %v3291_v5 = vld [vmem:[%s4184_s9 + $0x48] sm:$0xff]  }
 0x303   :  { %v1194_v6 = vadd.f32 %v2697_v2, %v1186_v4  ;;  %v3288_v2 = vld [vmem:[%s4184_s9 + $0xc0] sm:$0xff]  }
 0x304   :  { %v3290_v4 = vld [vmem:[%s4184_s9 + $0x80] sm:$0xff]  }
 0x305   :  { %v1195_v11 = vmax.f32 %v1194_v6, 0.0  ;;  %v3292_v6 = vld [vmem:[%s4184_s9 + $0xc8] sm:$0xff]  }
 0x307   :  { %v3867_v12 = vpack.c.bf16 %v1195_v11, %v1195_v11  ;;  %v3297_v11 = vld [vmem:[%s4184_s9 + $0x10] sm:$0xff]  }
 0x309   :  { %1656 = vmatmul.mubr.bf16.vlgmr.msra.gmra.mrb[16].mxu1 %v3867_v12  ;;  %1697 = vmatmul.mubr.bf16.vlgmr.msra.gmra.mrb[32].mxu0 %v3867_v12 }
 0x30a   :  { %1706 = vmatpush1.bf16.msra.mxu1 %v2702_v46  ;;  %1747 = vmatpush1.bf16.msra.mxu0 %v2704_v47  ;;  %v2745_v46 = vcombine.high %v1240_v41, %v1244_v42  ;;  %v1247_v47 = vld [vmem:[%s4182_s7 + $0x190] sm:$0xff] }
 0x30b   :  { %1707 = vmatprep.subr.bf16.mxu1 %v2711_v13  ;;  %1748 = vmatprep.subr.bf16.mxu0 %v2713_v14  ;;  %v2751_v53 = vcombine.high %v1247_v47, %v1251_v48  ;;  %v2750_v59 = vcombine.low %v1247_v47, %v1251_v48  ;;  %v3299_v13 = vld [vmem:[%s4184_s9 + $0x58] sm:$0xff]  }
 0x30c   :  { %1737 = vmatprep.mubr.bf16.mxu1 %v3377_v49  ;;  %1778 = vmatprep.mubr.bf16.mxu0 %v3377_v49  ;;  %v1248_v49 = vld [vmem:[%s4182_s7 + $0x198] sm:$0xff] }
 0x30d   :  { %v2753_v54 = vcombine.high %v1248_v49, %v1252_v50  ;;  %v2752_v60 = vcombine.low %v1248_v49, %v1252_v50  ;;  %v3300_v14 = vld [vmem:[%s4184_s9 + $0xd8] sm:$0xff]  }
 0x30e   :  { %1708 = vmatpush1.bf16.msra.mxu1 %v2710_v19  ;;  %1749 = vmatpush1.bf16.msra.mxu0 %v2712_v20  ;;  %v3305_v19 = vld [vmem:[%s4184_s9 + $0x20] sm:$0xff]  }
 0x30f   :  { %1709 = vmatprep.subr.bf16.mxu1 %v2719_v21  ;;  %1750 = vmatprep.subr.bf16.mxu0 %v2721_v22  ;;  %v3306_v20 = vld [vmem:[%s4184_s9 + $0xa0] sm:$0xff]   ;;  %v3307_v21 = vld [vmem:[%s4184_s9 + $0x68] sm:$0xff]  }
 0x310   :  { %v3308_v22 = vld [vmem:[%s4184_s9 + $0xe8] sm:$0xff]  }
 0x312   :  { %1710 = vmatpush1.bf16.msra.mxu1 %v2718_v27  ;;  %1751 = vmatpush1.bf16.msra.mxu0 %v2720_v28  ;;  %v3313_v27 = vld [vmem:[%s4184_s9 + $0x30] sm:$0xff]  }
 0x313   :  { %1711 = vmatprep.subr.bf16.mxu1 %v2727_v29  ;;  %1752 = vmatprep.subr.bf16.mxu0 %v2729_v30  ;;  %v3314_v28 = vld [vmem:[%s4184_s9 + $0xb0] sm:$0xff]   ;;  %v3315_v29 = vld [vmem:[%s4184_s9 + $0x78] sm:$0xff]  }
 0x314   :  { %v3316_v30 = vld [vmem:[%s4184_s9 + $0xf8] sm:$0xff]  }
 0x316   :  { %1712 = vmatpush1.bf16.msra.mxu1 %v2726_v36  ;;  %1753 = vmatpush1.bf16.msra.mxu0 %v2728_v37  ;;  %v1263_v36 = vlaneseq }
 0x317   :  { %1713 = vmatprep.subr.bf16.mxu1 %v2735_v34  ;;  %1754 = vmatprep.subr.bf16.mxu0 %v2737_v38 }
 0x318   :  { %v4047_v37 = vshrl.u32 %v1263_v36, 7  ;;  %v3346_v36 = vld [vmem:[%s4184_s9 + $0x1b0] sm:$0xff]  }
 0x31a   :  { %1714 = vmatpush1.bf16.msra.mxu1 %v2734_v44  ;;  %1755 = vmatpush1.bf16.msra.mxu0 %v2736_v45  ;;  %v1265_v34 = vsub.s32 0, %v4047_v37  ;;  %v1273_v38 = vsub.s32 2, %v4047_v37  ;;  %v1269_v40 = vsub.s32 1, %v4047_v37  ;;  %v1277_v41 = vsub.s32 3, %v4047_v37 }
 0x31b   :  { %1715 = vmatprep.subr.bf16.mxu1 %v2743_v43  ;;  %1756 = vmatprep.subr.bf16.mxu0 %v2745_v46 }
 0x31c   :  { %v1266_v42 = vrot.slane %v4054_v39, %v1265_v34  ;;  %v1274_v44 = vrot.slane %v4054_v39, %v1273_v38  ;;  %v1270_v45 = vrot.slane %v4054_v39, %v1269_v40  ;;  %v1278_v43 = vrot.slane %v4054_v39, %v1277_v41  ;;  %v3348_v34 = vld [vmem:[%s4184_s9 + $0x1f8] sm:$0xff]  }
 0x31e   :  { %1716 = vmatpush1.bf16.msra.mxu1 %v2742_v51  ;;  %1757 = vmatpush1.bf16.msra.mxu0 %v2744_v52 }
 0x31f   :  { %1717 = vmatprep.subr.bf16.mxu1 %v2751_v53  ;;  %1758 = vmatprep.subr.bf16.mxu0 %v2753_v54 }
 0x322   :  { %1718 = vmatpush1.bf16.msra.mxu1 %v2750_v59  ;;  %1759 = vmatpush1.bf16.msra.mxu0 %v2752_v60 }
 0x323   :  { %1719 = vmatprep.subr.bf16.mxu1 %v2759_v61  ;;  %1760 = vmatprep.subr.bf16.mxu0 %v2761_v62 }
 0x326   :  { %1720 = vmatpush1.bf16.msra.mxu1 %v2758_v63  ;;  %1761 = vmatpush1.bf16.msra.mxu0 %v2760_v0  ;;  %v3321_v0 = vld [vmem:[%s4184_s9 + $0x100] sm:$0xff]  }
 0x327   :  { %2919 = vmatprep.subr.bf16.mxu1 %v3287_v1  ;;  %2941 = vmatprep.subr.bf16.mxu0 %v3288_v2  ;;  %v3322_v1 = vld [vmem:[%s4184_s9 + $0x180] sm:$0xff]  }
 0x329   :  { %1738 = vmatmul.mubr.bf16.vlgmr.msra.gmra.mrb[20].mxu1 %v3867_v12  ;;  %1779 = vmatmul.mubr.bf16.vlgmr.msra.gmra.mrb[36].mxu0 %v3867_v12  ;;  %v3298_v12 = vld [vmem:[%s4184_s9 + $0x90] sm:$0xff]  }
 0x32a   :  { %2920 = vmatpush3.bf16.msra.mxu1 %v3289_v3  ;;  %2942 = vmatpush3.bf16.msra.mxu0 %v3290_v4  ;;  %v3323_v4 = vld [vmem:[%s4184_s9 + $0x148] sm:$0xff]  }
 0x32b   :  { %2921 = vmatprep.subr.bf16.mxu1 %v3291_v5  ;;  %2943 = vmatprep.subr.bf16.mxu0 %v3292_v6  ;;  %v3324_v5 = vld [vmem:[%s4184_s9 + $0x1c8] sm:$0xff]  }
 0x32c   :  { %v3325_v6 = vld [vmem:[%s4184_s9 + $0x108] sm:$0xff]  }
 0x32e   :  { %2922 = vmatpush3.bf16.msra.mxu1 %v3293_v7  ;;  %2944 = vmatpush3.bf16.msra.mxu0 %v3294_v8  ;;  %v3326_v7 = vld [vmem:[%s4184_s9 + $0x188] sm:$0xff]   ;;  %v3327_v8 = vld [vmem:[%s4184_s9 + $0x150] sm:$0xff]  }
 0x32f   :  { %2923 = vmatprep.subr.bf16.mxu1 %v3295_v9  ;;  %2945 = vmatprep.subr.bf16.mxu0 %v3296_v10  ;;  %v3328_v9 = vld [vmem:[%s4184_s9 + $0x1d0] sm:$0xff]  }
 0x330   :  { %v3329_v10 = vld [vmem:[%s4184_s9 + $0x110] sm:$0xff]  }
 0x332   :  { %2924 = vmatpush3.bf16.msra.mxu1 %v3297_v11  ;;  %2946 = vmatpush3.bf16.msra.mxu0 %v3298_v12  ;;  %v3330_v11 = vld [vmem:[%s4184_s9 + $0x190] sm:$0xff]   ;;  %v3331_v12 = vld [vmem:[%s4184_s9 + $0x158] sm:$0xff]  }
 0x333   :  { %2925 = vmatprep.subr.bf16.mxu1 %v3299_v13  ;;  %2947 = vmatprep.subr.bf16.mxu0 %v3300_v14  ;;  %v3332_v13 = vld [vmem:[%s4184_s9 + $0x1d8] sm:$0xff]  }
 0x334   :  { %v3333_v14 = vld [vmem:[%s4184_s9 + $0x118] sm:$0xff]  }
 0x336   :  { %2926 = vmatpush3.bf16.msra.mxu1 %v3301_v15  ;;  %2948 = vmatpush3.bf16.msra.mxu0 %v3302_v16  ;;  %v3334_v15 = vld [vmem:[%s4184_s9 + $0x198] sm:$0xff]   ;;  %v3335_v16 = vld [vmem:[%s4184_s9 + $0x160] sm:$0xff]  }
 0x337   :  { %2927 = vmatprep.subr.bf16.mxu1 %v3303_v17  ;;  %2949 = vmatprep.subr.bf16.mxu0 %v3304_v18  ;;  %v3336_v17 = vld [vmem:[%s4184_s9 + $0x1e0] sm:$0xff]  }
 0x338   :  { %v3337_v18 = vld [vmem:[%s4184_s9 + $0x120] sm:$0xff]  }
 0x33a   :  { %2928 = vmatpush3.bf16.msra.mxu1 %v3305_v19  ;;  %2950 = vmatpush3.bf16.msra.mxu0 %v3306_v20  ;;  %v3338_v19 = vld [vmem:[%s4184_s9 + $0x1a0] sm:$0xff]   ;;  %v3339_v20 = vld [vmem:[%s4184_s9 + $0x168] sm:$0xff]  }
 0x33b   :  { %2929 = vmatprep.subr.bf16.mxu1 %v3307_v21  ;;  %2951 = vmatprep.subr.bf16.mxu0 %v3308_v22  ;;  %v3340_v21 = vld [vmem:[%s4184_s9 + $0x1e8] sm:$0xff]   ;;  %v1281_v22 = vsub.s32 4, %v4047_v37 }
 0x33e   :  { %2930 = vmatpush3.bf16.msra.mxu1 %v3309_v23  ;;  %2952 = vmatpush3.bf16.msra.mxu0 %v3310_v24  ;;  %v1289_v23 = vsub.s32 6, %v4047_v37  ;;  %v3341_v24 = vld [vmem:[%s4184_s9 + $0x128] sm:$0xff]  }
 0x33f   :  { %2931 = vmatprep.subr.bf16.mxu1 %v3311_v25  ;;  %2953 = vmatprep.subr.bf16.mxu0 %v3312_v26  ;;  %v3342_v25 = vld [vmem:[%s4184_s9 + $0x1a8] sm:$0xff]   ;;  %v1285_v26 = vsub.s32 5, %v4047_v37 }
 0x342   :  { %2932 = vmatpush3.bf16.msra.mxu1 %v3313_v27  ;;  %2954 = vmatpush3.bf16.msra.mxu0 %v3314_v28  ;;  %v1293_v27 = vsub.s32 7, %v4047_v37  ;;  %v3343_v28 = vld [vmem:[%s4184_s9 + $0x170] sm:$0xff]   ;;  %v3347_v37 = vld [vmem:[%s4184_s9 + $0x178] sm:$0xff]  }
 0x343   :  { %2933 = vmatprep.subr.bf16.mxu1 %v3315_v29  ;;  %2955 = vmatprep.subr.bf16.mxu0 %v3316_v30  ;;  %v3344_v29 = vld [vmem:[%s4184_s9 + $0x1f0] sm:$0xff]   ;;  %v1282_v30 = vrot.slane %v4054_v39, %v1281_v22 }
 0x346   :  { %2934 = vmatpush3.bf16.msra.mxu1 %v3317_v31  ;;  %2956 = vmatpush3.bf16.msra.mxu0 %v3318_v32  ;;  %v1290_v31 = vrot.slane %v4054_v39, %v1289_v23  ;;  %v1286_v32 = vrot.slane %v4054_v39, %v1285_v26 }
 0x347   :  { %2963 = vmatprep.subr.bf16.mxu1 %v3319_v33  ;;  %2985 = vmatprep.subr.bf16.mxu0 %v3320_v35  ;;  %v1294_v33 = vrot.slane %v4054_v39, %v1293_v27  ;;  %v3345_v35 = vld [vmem:[%s4184_s9 + $0x130] sm:$0xff]  }
 0x3dc   :  { %v1657_v46 = vpop.f32.mrb[16].mxu1  ;;  %v1698_v47 = vpop.f32.mrb[32].mxu0 }
 0x3dd   :  { %v1658_v48 = vadd.f32 %v1657_v46, %v1266_v42  ;;  %v1699_v49 = vadd.f32 %v1698_v47, %v1274_v44  ;;  %v1659_v50 = vpop.f32.mrb[17].mxu1  ;;  %v1700_v51 = vpop.f32.mrb[33].mxu0 }
 0x3de   :  { %v1660_v52 = vadd.f32 %v1659_v50, %v1270_v45  ;;  %v1701_v53 = vadd.f32 %v1700_v51, %v1278_v43  ;;  %v1661_v54 = vpop.f32.mrb[18].mxu1  ;;  %v1702_v55 = vpop.f32.mrb[34].mxu0 }
 0x3df   :  { %v1787_v56 = vmax.f32 %v1658_v48, 0.0  ;;  %v1789_v57 = vmax.f32 %v1699_v49, 0.0  ;;  %v1662_v58 = vpop.f32.mrb[19].mxu1  ;;  %v1703_v59 = vpop.f32.mrb[35].mxu0  ;;  %v3349_v48 = vld [vmem:[%s4184_s9 + $0x138] sm:$0xff]  }
 0x3e0   :  { %v1788_v60 = vmax.f32 %v1660_v52, 0.0  ;;  %v1790_v61 = vmax.f32 %v1701_v53, 0.0  ;;  %v3350_v49 = vld [vmem:[%s4184_s9 + $0x1b8] sm:$0xff]  }
 0x3e1   :  { %v1795_v2 = vpack.c.bf16 %v1787_v56, %v1787_v56  ;;  %v1797_v3 = vpack.c.bf16 %v1789_v57, %v1789_v57 }
 0x3e2   :  { %v1796_v62 = vpack.c.bf16 %v1788_v60, %v1788_v60  ;;  %v1798_v63 = vpack.c.bf16 %v1790_v61, %v1790_v61  ;;  %v3378_v60 = vmov 6  }
 0x3e3   :  { %3206 = vset.pattern.permute.xlu0 %v3378_v60 }
 0x3e4   :  { %2354 = vmatprep.mubr.bf16.mxu1 %v1796_v62  ;;  %2394 = vmatprep.mubr.bf16.mxu0 %v1798_v63  ;;  %v2762_v63 = vld [vmem:[%s4185_s10] ss:$0 sm:$0xff] }
 0x3e5   :  { %2355 = vmatmul.mubr.bf16.vlgmr.msra.gmra.mrb[24].mxu1 %v1795_v2  ;;  %2395 = vmatmul.mubr.bf16.vlgmr.msra.gmra.mrb[40].mxu0 %v1797_v3 }
 0x3e6   :  { %2964 = vmatpush3.bf16.msra.mxu1 %v3321_v0  ;;  %2986 = vmatpush3.bf16.msra.mxu0 %v3322_v1 }
 0x3e7   :  { %2965 = vmatprep.subr.bf16.mxu1 %v3323_v4  ;;  %2987 = vmatprep.subr.bf16.mxu0 %v3324_v5 }
 0x3ea   :  { %2966 = vmatpush3.bf16.msra.mxu1 %v3325_v6  ;;  %2988 = vmatpush3.bf16.msra.mxu0 %v3326_v7 }
 0x3eb   :  { %2967 = vmatprep.subr.bf16.mxu1 %v3327_v8  ;;  %2989 = vmatprep.subr.bf16.mxu0 %v3328_v9 }
 0x3ee   :  { %2968 = vmatpush3.bf16.msra.mxu1 %v3329_v10  ;;  %2990 = vmatpush3.bf16.msra.mxu0 %v3330_v11 }
 0x3ef   :  { %2969 = vmatprep.subr.bf16.mxu1 %v3331_v12  ;;  %2991 = vmatprep.subr.bf16.mxu0 %v3332_v13 }
 0x3f2   :  { %2970 = vmatpush3.bf16.msra.mxu1 %v3333_v14  ;;  %2992 = vmatpush3.bf16.msra.mxu0 %v3334_v15 }
 0x3f3   :  { %2971 = vmatprep.subr.bf16.mxu1 %v3335_v16  ;;  %2993 = vmatprep.subr.bf16.mxu0 %v3336_v17 }
 0x3f6   :  { %2972 = vmatpush3.bf16.msra.mxu1 %v3337_v18  ;;  %2994 = vmatpush3.bf16.msra.mxu0 %v3338_v19 }
 0x3f7   :  { %2973 = vmatprep.subr.bf16.mxu1 %v3339_v20  ;;  %2995 = vmatprep.subr.bf16.mxu0 %v3340_v21 }
 0x3fa   :  { %2974 = vmatpush3.bf16.msra.mxu1 %v3341_v24  ;;  %2996 = vmatpush3.bf16.msra.mxu0 %v3342_v25 }
 0x3fb   :  { %2975 = vmatprep.subr.bf16.mxu1 %v3343_v28  ;;  %2997 = vmatprep.subr.bf16.mxu0 %v3344_v29 }
 0x3fc   :  { %v1739_v38 = vpop.f32.mrb[20].mxu1  ;;  %v1780_v39 = vpop.f32.mrb[36].mxu0 }
 0x3fd   :  { %v1740_v40 = vadd.f32 %v1739_v38, %v1282_v30  ;;  %v1781_v41 = vadd.f32 %v1780_v39, %v1290_v31  ;;  %v1741_v42 = vpop.f32.mrb[21].mxu1  ;;  %v1782_v44 = vpop.f32.mrb[37].mxu0 }
 0x3fe   :  { %v1742_v45 = vadd.f32 %v1741_v42, %v1286_v32  ;;  %v1783_v43 = vadd.f32 %v1782_v44, %v1294_v33  ;;  %v1743_v46 = vpop.f32.mrb[22].mxu1  ;;  %v1784_v47 = vpop.f32.mrb[38].mxu0  ;;  %2976 = vmatpush3.bf16.msra.mxu1 %v3345_v35  ;;  %2998 = vmatpush3.bf16.msra.mxu0 %v3346_v36 }
 0x3ff   :  { %v1791_v50 = vmax.f32 %v1740_v40, 0.0  ;;  %v1793_v51 = vmax.f32 %v1781_v41, 0.0  ;;  %v1744_v52 = vpop.f32.mrb[23].mxu1  ;;  %v1785_v53 = vpop.f32.mrb[39].mxu0  ;;  %2977 = vmatprep.subr.bf16.mxu1 %v3347_v37  ;;  %2999 = vmatprep.subr.bf16.mxu0 %v3348_v34 }
 0x400   :  { %v1792_v54 = vmax.f32 %v1742_v45, 0.0  ;;  %v1794_v55 = vmax.f32 %v1783_v43, 0.0 }
 0x401   :  { %v1799_v58 = vpack.c.bf16 %v1791_v50, %v1791_v50  ;;  %v1801_v59 = vpack.c.bf16 %v1793_v51, %v1793_v51 }
 0x402   :  { %v1800_v56 = vpack.c.bf16 %v1792_v54, %v1792_v54  ;;  %v1802_v57 = vpack.c.bf16 %v1794_v55, %v1794_v55  ;;  %2978 = vmatpush3.bf16.msra.mxu1 %v3349_v48  ;;  %3000 = vmatpush3.bf16.msra.mxu0 %v3350_v49 }
 0x404   :  { %2434 = vmatprep.mubr.bf16.mxu1 %v1800_v56  ;;  %2474 = vmatprep.mubr.bf16.mxu0 %v1802_v57 }
 0x405   :  { %2435 = vmatmul.mubr.bf16.vlgmr.msra.gmra.mrb[28].mxu1 %v1799_v58  ;;  %2475 = vmatmul.mubr.bf16.vlgmr.msra.gmra.mrb[44].mxu0 %v1801_v59 }
 0x4b8   :  { %v2935_v61 = vpop.f32.mrb[24].mxu1  ;;  %v2957_v62 = vpop.f32.mrb[40].mxu0 }
 0x4b9   :  { %v2936_v0 = vpop.f32.mrb[25].mxu1  ;;  %v2958_v1 = vpop.f32.mrb[41].mxu0 }
 0x4ba   :  { %v2937_v2 = vadd.f32 %v2936_v0, %v2935_v61  ;;  %v2959_v3 = vadd.f32 %v2958_v1, %v2957_v62  ;;  %v2938_v4 = vpop.f32.mrb[26].mxu1  ;;  %v2960_v5 = vpop.f32.mrb[42].mxu0 }
 0x4bb   :  { %v2939_v6 = vpop.f32.mrb[27].mxu1  ;;  %v2961_v7 = vpop.f32.mrb[43].mxu0 }
 0x4bc   :  { %v2357_v8 = vadd.f32 %v2937_v2, %v2762_v63 }
 0x4be   :  { %v2397_v9 = vadd.f32 %v2959_v3, %v2357_v8 }
 0x4d8   :  { %v2979_v10 = vpop.f32.mrb[28].mxu1  ;;  %v3001_v11 = vpop.f32.mrb[44].mxu0 }
 0x4d9   :  { %v2980_v12 = vpop.f32.mrb[29].mxu1  ;;  %v3002_v13 = vpop.f32.mrb[45].mxu0 }
 0x4da   :  { %v2981_v14 = vadd.f32 %v2980_v12, %v2979_v10  ;;  %v3003_v15 = vadd.f32 %v3002_v13, %v3001_v11  ;;  %v2982_v16 = vpop.f32.mrb[30].mxu1  ;;  %v3004_v17 = vpop.f32.mrb[46].mxu0 }
 0x4db   :  { %v2983_v18 = vpop.f32.mrb[31].mxu1  ;;  %v3005_v19 = vpop.f32.mrb[47].mxu0 }
 0x4dc   :  { %v2437_v20 = vadd.f32 %v2981_v14, %v2397_v9 }
 0x4de   :  { %v2477_v21 = vadd.f32 %v3003_v15, %v2437_v20 }
 0x4e0   :  { %v2483_v22 = vsel %vm2482_vm1, %v2477_v21, 0.0 }
 0x4e1   :  { %2484 = vadd.xlane.f32.xlu0 %v2483_v22 }
 0x4f7   :  { %2500 = vperm.xlu0 %3206, %v2477_v21  }
 0x56e   :  { %v2485_v23 = vpop.xlane.xlu0 %2484 }
 0x56f   :  { %v2486_v24 = vrot.slane %v2485_v23, 4 }
 0x571   :  { %v2487_v25 = vadd.f32 %v2486_v24, %v2485_v23 }
 0x573   :  { %v2488_v26 = vrot.slane %v2487_v25, 2 }
 0x575   :  { %v2489_v27 = vadd.f32 %v2488_v26, %v2487_v25 }
 0x576   :  { %v2501_v32 = vpop.permute.xlu0 %2500 }
 0x577   :  { %v2490_v28 = vrot.slane %v2489_v27, 1 }
 0x579   :  { %v2491_v29 = vadd.f32 %v2490_v28, %v2489_v27 }
 0x57b   :  { %3199 = vpush %v2491_v29 }
 0x5ac   :  { %s3200_s10 = spop %3199 }
 0x5ad   :  { %s2495_s4 = smul.f32 0.083333336, %s3200_s10 }
 0x5af   :  { %v2496_v30 = vstv %s2495_s4 }
 0x5b0   :  { %v2497_v31 = vsub.f32 %v2477_v21, %v2496_v30 }
 0x5b2   :  { %v2503_v33 = vadd.f32 %v2501_v32, %v2497_v31 }
 0x5b4   :  { %2504 = vst [vmem:[#allocation2] sm:$0x3] %v2503_v33 }
 0x5b5   :  { %3362 = shalt.err (!%p3359_p4)
}
 0x5b6   :  { %s3363_s29 = scalar_lea.hbm %s4186_s11, 32 }
 0x5b7   :  { %p3364_p5 = scmp.ne.s32.totalorder %s4186_s11, %s3363_s29  ;;  %p3367_p6 = scmp.lt.u32.totalorder %s3363_s29, %s4186_s11 }
 0x5b9   :  { %p3369_p7 = pnand %p3367_p6, %p3364_p5 }
 0x5bb   :  { %3372 = shalt.err (!%p3369_p7)
}
 0x5bc   :  { %2514 = dma.vmem_to_hbm [thread:$0]  %s2512_s26, 32, %s4186_s11, [#allocation3]  }
 0x5bd   :  { %3373 = dma.done.wait [#allocation3], 32  }
 0x5be   :  { %3374 = vsyncadd [#allocation3], 4294967264 }
 0x5bf   :  { %2518 = vsyncpa [#allocation3], 1 }

</bundles_post_ra>
